<compile_context>
chip_gen: v7x
topology: tpu7x:2x2x1
jax: 0.10.0
libtpu: 0.0.40
codegen_flags: <defaults>
</compile_context>

<pallas_src>
import functools
import math

import jax
import jax.numpy as jnp
from jax.experimental import pallas as pl
from jax.experimental.pallas import tpu as pltpu

_LN_EPS = 1e-5
_SQRT2 = math.sqrt(2.0)
_SQRT_2_OVER_PI = math.sqrt(2.0 / math.pi)


def _round_up(v, m):
    return ((v + m - 1) // m) * m


def _gelu(x, approximate):
    if approximate:
        # tanh approximation -> EUP slot (numerics-visible vs. PyTorch's default erf)
        return 0.5 * x * (1.0 + jnp.tanh(_SQRT_2_OVER_PI * (x + 0.044715 * x * x * x)))
    # F.gelu default ('none') = 0.5*x*(1 + erf(x/sqrt(2)))
    return 0.5 * x * (1.0 + jax.lax.erf(x / _SQRT2))


def _layernorm(x, gamma, beta, avg, matmul_dtype):
    """LayerNorm over the last dim (biased variance, eps=1e-5, like PyTorch).

    avg is None     : plain LN over the whole last dim (p == 1 layout).
    avg is a matrix : segmented LN for the packed layout.  `avg` is block-diagonal
                      with 1/seg_len blocks, so `x @ avg` broadcasts each packed
                      segment's mean to every position of that segment (the
                      otherwise-idle MXU does the cross-lane reduction).
    """
    if avg is None:
        mu = jnp.mean(x, axis=-1, keepdims=True)
        c = x - mu
        var = jnp.mean(c * c, axis=-1, keepdims=True)
    else:
        mu = jnp.dot(x.astype(matmul_dtype), avg, preferred_element_type=jnp.float32)
        c = x - mu
        var = jnp.dot((c * c).astype(matmul_dtype), avg,
                      preferred_element_type=jnp.float32)
    return c * jax.lax.rsqrt(var + _LN_EPS) * gamma + beta


def _seq_diff_kernel(*refs, n1, use_matrix_ln, matmul_dtype, approximate_gelu):
    if use_matrix_ln:
        (x1_ref, x2_ref, w1_ref, b1_ref, g1_ref, be1_ref, a1_ref,
         w2_ref, b2_ref, g2_ref, be2_ref, a2_ref, o_ref) = refs
        a1 = a1_ref[...]
        a2 = a2_ref[...]
    else:
        (x1_ref, x2_ref, w1_ref, b1_ref, g1_ref, be1_ref,
         w2_ref, b2_ref, g2_ref, be2_ref, o_ref) = refs
        a1 = a2 = None

    # Steps [0, n1) consume seq1 tiles, [n1, n1+n2) consume seq2 tiles.  The unused
    # stream's block index is clamped/constant so its DMA is elided by the pipeline.
    first_half = pl.program_id(0) < n1
    x = jnp.where(first_half, x1_ref[...], x2_ref[...])

    # Cast exactly once, at the MXU boundary (HBM streaming stays in the input dtype;
    # all LayerNorm/GELU elementwise math stays f32 -- v5e-safe).
    x = x.astype(matmul_dtype)

    h = jnp.dot(x, w1_ref[...], preferred_element_type=jnp.float32)
    h = h + b1_ref[...]
    h = _gelu(_layernorm(h, g1_ref[...], be1_ref[...], a1, matmul_dtype),
              approximate_gelu)

    h = h.astype(matmul_dtype)
    y = jnp.dot(h, w2_ref[...], preferred_element_type=jnp.float32)
    y = y + b2_ref[...]
    y = _gelu(_layernorm(y, g2_ref[...], be2_ref[...], a2, matmul_dtype),
              approximate_gelu)

    o_ref[...] = y.astype(o_ref.dtype)


def _vmem_capacity_bytes():
    try:
        cap = int(getattr(pltpu.get_tpu_info(), "vmem_capacity_bytes", 0) or 0)
        if cap > 0:
            return cap
    except Exception:
        pass
    return 64 << 20   # assume the smallest per-core VMEM (v7x) when unknown


def _default_matmul_dtype():
    # f32 matmuls are multi-pass emulation on v5e's MXU -> default to bf16 operands
    # (f32 accumulation) there; elsewhere stay f32 for exact parity with PyTorch.
    try:
        kind = jax.devices()[0].device_kind.lower()
    except Exception:
        kind = ""
    if "v5 lite" in kind or "v5e" in kind:
        return jnp.bfloat16
    return jnp.float32


def init_params(key, in_dim, out_dim):
    k1, k2, k3, k4 = jax.random.split(key, 4)
    # nn.Linear default init: U(-1/sqrt(fan_in), 1/sqrt(fan_in))
    bound1 = 1.0 / math.sqrt(2 * in_dim)
    bound2 = 1.0 / math.sqrt(in_dim)
    return {
        "w1": jax.random.uniform(k1, (in_dim, 2 * in_dim), jnp.float32, -bound1, bound1),
        "b1": jax.random.uniform(k2, (in_dim,), jnp.float32, -bound1, bound1),
        "w2": jax.random.uniform(k3, (out_dim, in_dim), jnp.float32, -bound2, bound2),
        "b2": jax.random.uniform(k4, (out_dim,), jnp.float32, -bound2, bound2),
        # LayerNorm default affine init: weight=1, bias=0
        "g1": jnp.ones((in_dim,), jnp.float32),
        "be1": jnp.zeros((in_dim,), jnp.float32),
        "g2": jnp.ones((out_dim,), jnp.float32),
        "be2": jnp.zeros((out_dim,), jnp.float32),
    }


def seq_difference_forward(seq1, seq2, params, *, matmul_dtype=None,
                           approximate_gelu=False, out_dtype=None):
    assert seq1.shape[1:] == seq2.shape[1:], "torch.cat(dim=0) needs matching trailing dims"
    assert seq1.dtype == seq2.dtype
    in2 = seq1.shape[-1]
    in_dim = in2 // 2
    out_dim = params["w2"].shape[0]

    if matmul_dtype is None:
        matmul_dtype = _default_matmul_dtype()
    if out_dtype is None:
        out_dtype = seq1.dtype

    in_isz = jnp.dtype(seq1.dtype).itemsize
    md_isz = jnp.dtype(matmul_dtype).itemsize
    out_isz = jnp.dtype(out_dtype).itemsize

    M1 = math.prod(seq1.shape[:-1])
    M2 = math.prod(seq2.shape[:-1])
    lead = (seq1.shape[0] + seq2.shape[0],) + tuple(seq1.shape[1:-1])

    # ---- row packing factor p: lane-dense stages for narrow feature dims ---------
    min_dim = min(in2, in_dim, out_dim)
    max_dim = max(in2, in_dim, out_dim)
    p = 1
    while p * min_dim < 128 and p < 16:
        p *= 2                                   # stop at 128 lanes (don't over-pack)
    while p > 1 and p * max_dim > 1024:
        p //= 2                                  # keep block-diag weights small
    while p > 1 and (M1 % p or M2 % p):
        p //= 2                                  # keep the packed reshape a zero-copy view
    use_matrix_ln = p > 1

    mp1, mp2 = M1 // p, M2 // p
    mp_tot = mp1 + mp2

    # ---- row tile (packed rows per grid step) -------------------------------------
    # Target ~8 MiB of HBM traffic per step (per-step overhead ~0.35us), bounded by a
    # VMEM budget that counts streams, invariants AND the in-kernel f32 intermediates.
    row_stream = p * (in2 * in_isz + out_dim * out_isz)
    stream_rows = max(8, (8 << 20) // row_stream)
    vmem_cap = _vmem_capacity_bytes()
    vmem_budget = int(min(0.45 * vmem_cap, 56 << 20))
    const_elems_md = p * p * (2 * in_dim * in_dim + in_dim * out_dim)      # w1bd + w2bd
    if use_matrix_ln:
        const_elems_md += p * p * (in_dim * in_dim + out_dim * out_dim)    # a1 + a2
    const_vmem = 2 * (const_elems_md * md_isz + p * 3 * (in_dim + out_dim) * 4)
    row_vmem = p * (2 * 2 * in2 * in_isz              # two input streams, double-buffered
                    + 2 * out_dim * out_isz           # output stream, double-buffered
                    + (2 * in2 + 3 * in_dim + 3 * out_dim) * 4)   # live intermediates (est.)
    vmem_rows = max(8, (vmem_budget - const_vmem) // row_vmem)
    tmp = min(stream_rows, vmem_rows)
    if mp_tot >= 32:
        tmp = min(tmp, pl.cdiv(mp_tot, 4))            # >=4 steps total -> >=2 per v7x core
    tmp = min(tmp, max(mp1, mp2, 8))
    tmp = _round_up(max(tmp, 8), 8)

    n1 = pl.cdiv(mp1, tmp)
    n2 = pl.cdiv(mp2, tmp)
    num_steps = n1 + n2

    # ---- zero-copy packed views (no concat / pad / cast passes over HBM) -----------
    xp1 = seq1.reshape(mp1, p * in2)
    xp2 = seq2.reshape(mp2, p * in2)

    # ---- weights: pre-transposed, block-diagonal for the packed layout -------------
    w1t = params["w1"].T.astype(jnp.float32)          # (2*in_dim, in_dim)
    w2t = params["w2"].T.astype(jnp.float32)          # (in_dim, out_dim)
    eye_p = jnp.eye(p, dtype=jnp.float32)
    w1bd = jnp.kron(eye_p, w1t).astype(matmul_dtype)  # (p*2d, p*d)
    w2bd = jnp.kron(eye_p, w2t).astype(matmul_dtype)  # (p*d,  p*o)

    def tile_vec(v, width):
        return jnp.tile(v.astype(jnp.float32), p).reshape(1, width)

    b1t = tile_vec(params["b1"], p * in_dim)
    g1t = tile_vec(params["g1"], p * in_dim)
    be1t = tile_vec(params["be1"], p * in_dim)
    b2t = tile_vec(params["b2"], p * out_dim)
    g2t = tile_vec(params["g2"], p * out_dim)
    be2t = tile_vec(params["be2"], p * out_dim)

    if use_matrix_ln:
        # Segment-mean broadcast matrices; 1/16, 1/32, ... are exact in bf16.
        a1 = jnp.kron(eye_p, jnp.full((in_dim, in_dim), 1.0 / in_dim, jnp.float32)
                      ).astype(matmul_dtype)
        a2 = jnp.kron(eye_p, jnp.full((out_dim, out_dim), 1.0 / out_dim, jnp.float32)
                      ).astype(matmul_dtype)

    # ---- specs ----------------------------------------------------------------------
    def const_spec(shape):
        return pl.BlockSpec(shape, lambda i: (0, 0))

    x1_spec = pl.BlockSpec((tmp, p * in2), lambda i: (jnp.minimum(i, n1 - 1), 0))
    x2_spec = pl.BlockSpec((tmp, p * in2), lambda i: (jnp.maximum(i - n1, 0), 0))
    out_spec = pl.BlockSpec((tmp, p * out_dim), lambda i: (i, 0))

    in_specs = [x1_spec, x2_spec,
                const_spec((p * in2, p * in_dim)),
                const_spec((1, p * in_dim)), const_spec((1, p * in_dim)),
                const_spec((1, p * in_dim))]
    args = [xp1, xp2, w1bd, b1t, g1t, be1t]
    if use_matrix_ln:
        in_specs.append(const_spec((p * in_dim, p * in_dim)))
        args.append(a1)
    in_specs += [const_spec((p * in_dim, p * out_dim)),
                 const_spec((1, p * out_dim)), const_spec((1, p * out_dim)),
                 const_spec((1, p * out_dim))]
    args += [w2bd, b2t, g2t, be2t]
    if use_matrix_ln:
        in_specs.append(const_spec((p * out_dim, p * out_dim)))
        args.append(a2)

    # ---- cost / VMEM bookkeeping ------------------------------------------------------
    rows_comp = num_steps * tmp                       # packed rows computed (incl. tail pad)
    flops = 2 * rows_comp * (p * in2 * p * in_dim + p * in_dim * p * out_dim)
    if use_matrix_ln:
        flops += 4 * rows_comp * ((p * in_dim) ** 2 + (p * out_dim) ** 2)
    transcendentals = 2 * rows_comp * p * (in_dim + out_dim)
    bytes_accessed = int((M1 + M2) * in2 * in_isz
                         + rows_comp * p * out_dim * out_isz
                         + const_elems_md * md_isz
                         + p * 3 * (in_dim + out_dim) * 4)

    # Scoped-VMEM cap: well below physical on v7x (64 MiB), generous on v5e/v6e (128 MiB).
    vmem_limit = int(max(min(0.75 * vmem_cap, 100 << 20), 16 << 20))

    out = pl.pallas_call(
        functools.partial(_seq_diff_kernel, n1=n1, use_matrix_ln=use_matrix_ln,
                          matmul_dtype=matmul_dtype,
                          approximate_gelu=approximate_gelu),
        out_shape=jax.ShapeDtypeStruct((num_steps * tmp, p * out_dim), out_dtype),
        grid_spec=pltpu.PrefetchScalarGridSpec(
            num_scalar_prefetch=0,
            grid=(num_steps,),
            in_specs=in_specs,
            out_specs=out_spec,
        ),
        compiler_params=pltpu.CompilerParams(
            dimension_semantics=("parallel",),
            vmem_limit_bytes=vmem_limit,
        ),
        cost_estimate=pl.CostEstimate(
            flops=int(flops),
            transcendentals=int(transcendentals),
            bytes_accessed=bytes_accessed,
        ),
    )(*args)

    # ---- unpack (zero-copy when the halves tile exactly; ragged tails restitched) ------
    if mp1 == n1 * tmp and mp2 == n2 * tmp:
        y = out.reshape(M1 + M2, out_dim)
    else:
        y1 = out[:mp1].reshape(M1, out_dim)
        y2 = out[n1 * tmp:n1 * tmp + mp2].reshape(M2, out_dim)
        y = jnp.concatenate([y1, y2], axis=0)
    return y.reshape(*lead, out_dim)


def _reference(seq1, seq2, params):
    # pure-JAX reference mirroring the PyTorch forward (f32 end-to-end, exact erf GELU)
    def ln(v, g, b):
        mu = jnp.mean(v, axis=-1, keepdims=True)
        var = jnp.mean((v - mu) ** 2, axis=-1, keepdims=True)
        return (v - mu) * jax.lax.rsqrt(var + _LN_EPS) * g + b

    x = jnp.concatenate([seq1, seq2], axis=0).astype(jnp.float32)
    h = x @ params["w1"].T + params["b1"]
    h = _gelu(ln(h, params["g1"], params["be1"]), False)
    y = h @ params["w2"].T + params["b2"]
    y = _gelu(ln(y, params["g2"], params["be2"]), False)
    return y


if __name__ == "__main__":
    in_dim, out_dim = 16, 32
    key = jax.random.PRNGKey(0)
    kp, k1, k2, k3, k4 = jax.random.split(key, 5)
    params = init_params(kp, in_dim, out_dim)

    # --- Case A: aligned shapes -> packed lane-dense fast path, zero-copy in/out ---
    seq1 = jax.random.normal(k1, (2, 32, 2 * in_dim), jnp.float32)
    seq2 = jax.random.normal(k2, (2, 32, 2 * in_dim), jnp.float32)
    ref = _reference(seq1, seq2, params)

    out_f32 = seq_difference_forward(seq1, seq2, params, matmul_dtype=jnp.float32)
    jax.block_until_ready(out_f32)
    assert out_f32.shape == (4, 32, out_dim), out_f32.shape
    assert jnp.allclose(out_f32, ref, atol=1e-4, rtol=1e-4), \
        float(jnp.max(jnp.abs(out_f32 - ref)))

    out_bf16 = seq_difference_forward(seq1, seq2, params, matmul_dtype=jnp.bfloat16)
    jax.block_until_ready(out_bf16)
    assert out_bf16.shape == (4, 32, out_dim), out_bf16.shape
    assert jnp.allclose(out_bf16, ref, atol=1e-1, rtol=1e-1), \
        float(jnp.max(jnp.abs(out_bf16 - ref)))

    out_auto = seq_difference_forward(seq1, seq2, params)   # device-dependent default dtype
    jax.block_until_ready(out_auto)
    assert jnp.allclose(out_auto, ref, atol=1e-1, rtol=1e-1)

    # --- Case B: ragged/odd shapes, different batch sizes -> p=1 fallback, partial
    #             last tiles and output restitching ----------------------------------
    seq1b = jax.random.normal(k3, (3, 5, 2 * in_dim), jnp.float32)
    seq2b = jax.random.normal(k4, (2, 5, 2 * in_dim), jnp.float32)
    refb = _reference(seq1b, seq2b, params)
    outb = seq_difference_forward(seq1b, seq2b, params, matmul_dtype=jnp.float32)
    jax.block_until_ready(outb)
    assert outb.shape == (5, 5, out_dim), outb.shape
    assert jnp.allclose(outb, refb, atol=1e-4, rtol=1e-4), \
        float(jnp.max(jnp.abs(outb - refb)))

    print("KERNEL_OK")
</pallas_src>

<mosaic_0001>
module attributes {stable_mosaic.version = 11 : i64} {
  func.func @_seq_diff_kernel(%arg0: i32, %arg1: memref<8x256xf32, #tpu.memory_space<vmem>>, %arg2: memref<8x256xf32, #tpu.memory_space<vmem>>, %arg3: memref<256x128xf32, #tpu.memory_space<vmem>>, %arg4: memref<1x128xf32, #tpu.memory_space<vmem>>, %arg5: memref<1x128xf32, #tpu.memory_space<vmem>>, %arg6: memref<1x128xf32, #tpu.memory_space<vmem>>, %arg7: memref<128x128xf32, #tpu.memory_space<vmem>>, %arg8: memref<128x256xf32, #tpu.memory_space<vmem>>, %arg9: memref<1x256xf32, #tpu.memory_space<vmem>>, %arg10: memref<1x256xf32, #tpu.memory_space<vmem>>, %arg11: memref<1x256xf32, #tpu.memory_space<vmem>>, %arg12: memref<256x256xf32, #tpu.memory_space<vmem>>, %arg13: memref<8x256xf32, #tpu.memory_space<vmem>>) attributes {dimension_semantics = [#tpu.dimension_semantics<parallel>], iteration_bounds = array<i64: 2>, scalar_prefetch = 0 : i64, scratch_operands = 0 : i64, tpu.core_type = #tpu.core_type<tc>, window_params = [{transform_indices = @transform_0, window_bounds = array<i64: 8, 256>}, {transform_indices = @transform_1, window_bounds = array<i64: 8, 256>}, {pipeline_mode = #tpu.pipeline_mode<synchronous>, transform_indices = @transform_2, window_bounds = array<i64: 256, 128>}, {pipeline_mode = #tpu.pipeline_mode<synchronous>, transform_indices = @transform_3, window_bounds = array<i64: 1, 128>}, {pipeline_mode = #tpu.pipeline_mode<synchronous>, transform_indices = @transform_4, window_bounds = array<i64: 1, 128>}, {pipeline_mode = #tpu.pipeline_mode<synchronous>, transform_indices = @transform_5, window_bounds = array<i64: 1, 128>}, {pipeline_mode = #tpu.pipeline_mode<synchronous>, transform_indices = @transform_6, window_bounds = array<i64: 128, 128>}, {pipeline_mode = #tpu.pipeline_mode<synchronous>, transform_indices = @transform_7, window_bounds = array<i64: 128, 256>}, {pipeline_mode = #tpu.pipeline_mode<synchronous>, transform_indices = @transform_8, window_bounds = array<i64: 1, 256>}, {pipeline_mode = #tpu.pipeline_mode<synchronous>, transform_indices = @transform_9, window_bounds = array<i64: 1, 256>}, {pipeline_mode = #tpu.pipeline_mode<synchronous>, transform_indices = @transform_10, window_bounds = array<i64: 1, 256>}, {pipeline_mode = #tpu.pipeline_mode<synchronous>, transform_indices = @transform_11, window_bounds = array<i64: 256, 256>}, {transform_indices = @transform_12, window_bounds = array<i64: 8, 256>}]} {
    %c0 = arith.constant 0 : index
    %c0_0 = arith.constant 0 : index
    %0 = vector.load %arg7[%c0, %c0_0] : memref<128x128xf32, #tpu.memory_space<vmem>>, vector<128x128xf32>
    %c0_1 = arith.constant 0 : index
    %c0_2 = arith.constant 0 : index
    %1 = vector.load %arg12[%c0_1, %c0_2] : memref<256x256xf32, #tpu.memory_space<vmem>>, vector<256x256xf32>
    %c1_i32 = arith.constant 1 : i32
    %2 = arith.cmpi slt, %arg0, %c1_i32 : i32
    %c0_3 = arith.constant 0 : index
    %c0_4 = arith.constant 0 : index
    %3 = vector.load %arg1[%c0_3, %c0_4] : memref<8x256xf32, #tpu.memory_space<vmem>>, vector<8x256xf32>
    %c0_5 = arith.constant 0 : index
    %c0_6 = arith.constant 0 : index
    %4 = vector.load %arg2[%c0_5, %c0_6] : memref<8x256xf32, #tpu.memory_space<vmem>>, vector<8x256xf32>
    %5 = arith.select %2, %3, %4 : vector<8x256xf32>
    %c0_7 = arith.constant 0 : index
    %c0_8 = arith.constant 0 : index
    %6 = vector.load %arg3[%c0_7, %c0_8] : memref<256x128xf32, #tpu.memory_space<vmem>>, vector<256x128xf32>
    %cst = arith.constant dense<0.000000e+00> : vector<8x128xf32>
    %7 = tpu.matmul %5, %6, %cst {dimension_numbers = #tpu.dot_dimension_numbers<[1], [0], [0], [1], [0, 0, 1, 1], [], []>} : vector<8x256xf32>, vector<256x128xf32>, vector<8x128xf32> -> vector<8x128xf32>
    %c0_9 = arith.constant 0 : index
    %c0_10 = arith.constant 0 : index
    %8 = vector.load %arg4[%c0_9, %c0_10] : memref<1x128xf32, #tpu.memory_space<vmem>>, vector<1x128xf32>
    %9 = vector.broadcast %8 : vector<1x128xf32> to vector<8x128xf32>
    %10 = arith.addf %7, %9 : vector<8x128xf32>
    %c0_11 = arith.constant 0 : index
    %c0_12 = arith.constant 0 : index
    %11 = vector.load %arg5[%c0_11, %c0_12] : memref<1x128xf32, #tpu.memory_space<vmem>>, vector<1x128xf32>
    %c0_13 = arith.constant 0 : index
    %c0_14 = arith.constant 0 : index
    %12 = vector.load %arg6[%c0_13, %c0_14] : memref<1x128xf32, #tpu.memory_space<vmem>>, vector<1x128xf32>
    %cst_15 = arith.constant dense<0.000000e+00> : vector<8x128xf32>
    %13 = tpu.matmul %10, %0, %cst_15 {dimension_numbers = #tpu.dot_dimension_numbers<[1], [0], [0], [1], [0, 0, 1, 1], [], []>} : vector<8x128xf32>, vector<128x128xf32>, vector<8x128xf32> -> vector<8x128xf32>
    %14 = arith.subf %10, %13 : vector<8x128xf32>
    %15 = arith.mulf %14, %14 : vector<8x128xf32>
    %cst_16 = arith.constant dense<0.000000e+00> : vector<8x128xf32>
    %16 = tpu.matmul %15, %0, %cst_16 {dimension_numbers = #tpu.dot_dimension_numbers<[1], [0], [0], [1], [0, 0, 1, 1], [], []>} : vector<8x128xf32>, vector<128x128xf32>, vector<8x128xf32> -> vector<8x128xf32>
    %cst_17 = arith.constant 9.99999974E-6 : f32
    %17 = vector.broadcast %cst_17 : f32 to vector<8x128xf32>
    %18 = arith.addf %16, %17 : vector<8x128xf32>
    %19 = math.rsqrt %18 : vector<8x128xf32>
    %20 = arith.mulf %14, %19 : vector<8x128xf32>
    %21 = vector.broadcast %11 : vector<1x128xf32> to vector<8x128xf32>
    %22 = arith.mulf %20, %21 : vector<8x128xf32>
    %23 = vector.broadcast %12 : vector<1x128xf32> to vector<8x128xf32>
    %24 = arith.addf %22, %23 : vector<8x128xf32>
    %cst_18 = arith.constant 5.000000e-01 : f32
    %25 = vector.broadcast %cst_18 : f32 to vector<8x128xf32>
    %26 = arith.mulf %25, %24 : vector<8x128xf32>
    %cst_19 = arith.constant 1.41421354 : f32
    %27 = vector.broadcast %cst_19 : f32 to vector<8x128xf32>
    %28 = arith.divf %24, %27 : vector<8x128xf32>
    %29 = math.erf %28 : vector<8x128xf32>
    %cst_20 = arith.constant 1.000000e+00 : f32
    %30 = vector.broadcast %cst_20 : f32 to vector<8x128xf32>
    %31 = arith.addf %30, %29 : vector<8x128xf32>
    %32 = arith.mulf %26, %31 : vector<8x128xf32>
    %c0_21 = arith.constant 0 : index
    %c0_22 = arith.constant 0 : index
    %33 = vector.load %arg8[%c0_21, %c0_22] : memref<128x256xf32, #tpu.memory_space<vmem>>, vector<128x256xf32>
    %cst_23 = arith.constant dense<0.000000e+00> : vector<8x256xf32>
    %34 = tpu.matmul %32, %33, %cst_23 {dimension_numbers = #tpu.dot_dimension_numbers<[1], [0], [0], [1], [0, 0, 1, 1], [], []>} : vector<8x128xf32>, vector<128x256xf32>, vector<8x256xf32> -> vector<8x256xf32>
    %c0_24 = arith.constant 0 : index
    %c0_25 = arith.constant 0 : index
    %35 = vector.load %arg9[%c0_24, %c0_25] : memref<1x256xf32, #tpu.memory_space<vmem>>, vector<1x256xf32>
    %36 = vector.broadcast %35 : vector<1x256xf32> to vector<8x256xf32>
    %37 = arith.addf %34, %36 : vector<8x256xf32>
    %c0_26 = arith.constant 0 : index
    %c0_27 = arith.constant 0 : index
    %38 = vector.load %arg10[%c0_26, %c0_27] : memref<1x256xf32, #tpu.memory_space<vmem>>, vector<1x256xf32>
    %c0_28 = arith.constant 0 : index
    %c0_29 = arith.constant 0 : index
    %39 = vector.load %arg11[%c0_28, %c0_29] : memref<1x256xf32, #tpu.memory_space<vmem>>, vector<1x256xf32>
    %cst_30 = arith.constant dense<0.000000e+00> : vector<8x256xf32>
    %40 = tpu.matmul %37, %1, %cst_30 {dimension_numbers = #tpu.dot_dimension_numbers<[1], [0], [0], [1], [0, 0, 1, 1], [], []>} : vector<8x256xf32>, vector<256x256xf32>, vector<8x256xf32> -> vector<8x256xf32>
    %41 = arith.subf %37, %40 : vector<8x256xf32>
    %42 = arith.mulf %41, %41 : vector<8x256xf32>
    %cst_31 = arith.constant dense<0.000000e+00> : vector<8x256xf32>
    %43 = tpu.matmul %42, %1, %cst_31 {dimension_numbers = #tpu.dot_dimension_numbers<[1], [0], [0], [1], [0, 0, 1, 1], [], []>} : vector<8x256xf32>, vector<256x256xf32>, vector<8x256xf32> -> vector<8x256xf32>
    %cst_32 = arith.constant 9.99999974E-6 : f32
    %44 = vector.broadcast %cst_32 : f32 to vector<8x256xf32>
    %45 = arith.addf %43, %44 : vector<8x256xf32>
    %46 = math.rsqrt %45 : vector<8x256xf32>
    %47 = arith.mulf %41, %46 : vector<8x256xf32>
    %48 = vector.broadcast %38 : vector<1x256xf32> to vector<8x256xf32>
    %49 = arith.mulf %47, %48 : vector<8x256xf32>
    %50 = vector.broadcast %39 : vector<1x256xf32> to vector<8x256xf32>
    %51 = arith.addf %49, %50 : vector<8x256xf32>
    %cst_33 = arith.constant 5.000000e-01 : f32
    %52 = vector.broadcast %cst_33 : f32 to vector<8x256xf32>
    %53 = arith.mulf %52, %51 : vector<8x256xf32>
    %cst_34 = arith.constant 1.41421354 : f32
    %54 = vector.broadcast %cst_34 : f32 to vector<8x256xf32>
    %55 = arith.divf %51, %54 : vector<8x256xf32>
    %56 = math.erf %55 : vector<8x256xf32>
    %cst_35 = arith.constant 1.000000e+00 : f32
    %57 = vector.broadcast %cst_35 : f32 to vector<8x256xf32>
    %58 = arith.addf %57, %56 : vector<8x256xf32>
    %59 = arith.mulf %53, %58 : vector<8x256xf32>
    %c0_36 = arith.constant 0 : index
    %c0_37 = arith.constant 0 : index
    %60 = vector.load %arg13[%c0_36, %c0_37] : memref<8x256xf32, #tpu.memory_space<vmem>>, vector<8x256xf32>
    tpu.vector_store %arg13[%c0_36, %c0_37], %59 {strides = array<i32>} : memref<8x256xf32, #tpu.memory_space<vmem>>, vector<8x256xf32>,
    return
  }
  func.func @transform_0(%arg0: i32) -> (i32, i32) {
    %c0_i32 = arith.constant 0 : i32
    %0 = arith.minsi %arg0, %c0_i32 : i32
    %c0_i32_0 = arith.constant 0 : i32
    %c0_i32_1 = arith.constant 0 : i32
    return %0, %c0_i32_0 : i32, i32
  }
  func.func @transform_1(%arg0: i32) -> (i32, i32) {
    %c1_i32 = arith.constant 1 : i32
    %0 = arith.subi %arg0, %c1_i32 : i32
    %c0_i32 = arith.constant 0 : i32
    %1 = arith.maxsi %0, %c0_i32 : i32
    %c0_i32_0 = arith.constant 0 : i32
    %c0_i32_1 = arith.constant 0 : i32
    return %1, %c0_i32_0 : i32, i32
  }
  func.func @transform_2(%arg0: i32) -> (i32, i32) {
    %c0_i32 = arith.constant 0 : i32
    %c0_i32_0 = arith.constant 0 : i32
    %c0_i32_1 = arith.constant 0 : i32
    return %c0_i32, %c0_i32_0 : i32, i32
  }
  func.func @transform_3(%arg0: i32) -> (i32, i32) {
    %c0_i32 = arith.constant 0 : i32
    %c0_i32_0 = arith.constant 0 : i32
    %c0_i32_1 = arith.constant 0 : i32
    return %c0_i32, %c0_i32_0 : i32, i32
  }
  func.func @transform_4(%arg0: i32) -> (i32, i32) {
    %c0_i32 = arith.constant 0 : i32
    %c0_i32_0 = arith.constant 0 : i32
    %c0_i32_1 = arith.constant 0 : i32
    return %c0_i32, %c0_i32_0 : i32, i32
  }
  func.func @transform_5(%arg0: i32) -> (i32, i32) {
    %c0_i32 = arith.constant 0 : i32
    %c0_i32_0 = arith.constant 0 : i32
    %c0_i32_1 = arith.constant 0 : i32
    return %c0_i32, %c0_i32_0 : i32, i32
  }
  func.func @transform_6(%arg0: i32) -> (i32, i32) {
    %c0_i32 = arith.constant 0 : i32
    %c0_i32_0 = arith.constant 0 : i32
    %c0_i32_1 = arith.constant 0 : i32
    return %c0_i32, %c0_i32_0 : i32, i32
  }
  func.func @transform_7(%arg0: i32) -> (i32, i32) {
    %c0_i32 = arith.constant 0 : i32
    %c0_i32_0 = arith.constant 0 : i32
    %c0_i32_1 = arith.constant 0 : i32
    return %c0_i32, %c0_i32_0 : i32, i32
  }
  func.func @transform_8(%arg0: i32) -> (i32, i32) {
    %c0_i32 = arith.constant 0 : i32
    %c0_i32_0 = arith.constant 0 : i32
    %c0_i32_1 = arith.constant 0 : i32
    return %c0_i32, %c0_i32_0 : i32, i32
  }
  func.func @transform_9(%arg0: i32) -> (i32, i32) {
    %c0_i32 = arith.constant 0 : i32
    %c0_i32_0 = arith.constant 0 : i32
    %c0_i32_1 = arith.constant 0 : i32
    return %c0_i32, %c0_i32_0 : i32, i32
  }
  func.func @transform_10(%arg0: i32) -> (i32, i32) {
    %c0_i32 = arith.constant 0 : i32
    %c0_i32_0 = arith.constant 0 : i32
    %c0_i32_1 = arith.constant 0 : i32
    return %c0_i32, %c0_i32_0 : i32, i32
  }
  func.func @transform_11(%arg0: i32) -> (i32, i32) {
    %c0_i32 = arith.constant 0 : i32
    %c0_i32_0 = arith.constant 0 : i32
    %c0_i32_1 = arith.constant 0 : i32
    return %c0_i32, %c0_i32_0 : i32, i32
  }
  func.func @transform_12(%arg0: i32) -> (i32, i32) {
    %c0_i32 = arith.constant 0 : i32
    %c0_i32_0 = arith.constant 0 : i32
    return %arg0, %c0_i32 : i32, i32
  }
}

</mosaic_0001>

<bundles_post_ra>
// kernel: tpu_custom_call.1
= control target key start
LH: loop header
LB: loop body
LE: loop exit
PB: predicated region body
PF: predicated region fallthrough
CT: control target
= control target key end

     0   :  { %s2882_s0 = inlined_call_operand.hbm [shape: f32[8,256], index: 0, kind: input, shape index: {}]   ;;  %s2883_s1 = inlined_call_operand.hbm [shape: f32[8,256], index: 1, kind: input, shape index: {}]   ;;  %s2884_s2 = inlined_call_operand.hbm [shape: f32[256,128], index: 2, kind: input, shape index: {}]   ;;  %s2885_s3 = inlined_call_operand.vmem [shape: f32[1,128], index: 3, kind: input, shape index: {}]   ;;  %s2886_s4 = inlined_call_operand.vmem [shape: f32[1,128], index: 4, kind: input, shape index: {}]   ;;  %s2887_s5 = inlined_call_operand.vmem [shape: f32[1,128], index: 5, kind: input, shape index: {}]   ;;  %s2888_s6 = inlined_call_operand.hbm [shape: f32[128,128], index: 6, kind: input, shape index: {}]   ;;  %s2889_s7 = inlined_call_operand.hbm [shape: f32[128,256], index: 7, kind: input, shape index: {}]   ;;  %s2890_s8 = inlined_call_operand.vmem [shape: f32[1,256], index: 8, kind: input, shape index: {}]   ;;  %s2891_s9 = inlined_call_operand.vmem [shape: f32[1,256], index: 9, kind: input, shape index: {}]   ;;  %s2892_s10 = inlined_call_operand.vmem [shape: f32[1,256], index: 10, kind: input, shape index: {}]   ;;  %s2893_s11 = inlined_call_operand.hbm [shape: f32[256,256], index: 11, kind: input, shape index: {}]   ;;  %s2894_s12 = inlined_call_operand.hbm [shape: f32[16,256], index: 12, kind: output, shape index: {}]  }
   0x1   :  { %2904 = sst [smem:[#allocation22_spill]] %s2882_s0 }
   0x2   :  { %2905 = sst [smem:[#allocation23_spill]] %s2883_s1 }
   0x3   :  { %2906 = sst [smem:[#allocation24_spill]] %s2884_s2 }
   0x4   :  { %2907 = sst [smem:[#allocation25_spill]] %s2885_s3 }
   0x5   :  { %2908 = sst [smem:[#allocation26_spill]] %s2886_s4 }
   0x6   :  { %2909 = sst [smem:[#allocation27_spill]] %s2887_s5 }
   0x7   :  { %2910 = sst [smem:[#allocation28_spill]] %s2888_s6 }
   0x8   :  { %2911 = sst [smem:[#allocation29_spill]] %s2889_s7 }
   0x9   :  { %2912 = sst [smem:[#allocation30_spill]] %s2890_s8 }
   0xa   :  { %2913 = sst [smem:[#allocation31_spill]] %s2891_s9 }
   0xb   :  { %2914 = sst [smem:[#allocation32_spill]] %s2892_s10 }
   0xc   :  { %2915 = sst [smem:[#allocation33_spill]] %s2893_s11 }
   0xd   :  { %2916 = sst [smem:[#allocation34_spill]] %s2894_s12 }
   0xe   :  { %17 = vsyncpa [#allocation3], 0 }
   0xf   :  { %19 = vsyncpa [#allocation3 + $0x1], 0 }
  0x10   :  { %20 = vsyncpa [#allocation6], 0 }
  0x11   :  { %22 = vsyncpa [#allocation6 + $0x1], 0 }
  0x12   :  { %23 = vsyncpa [#allocation9], 0 }
  0x13   :  { %24 = vsyncpa [#allocation12], 0 }
  0x14   :  { %25 = vsyncpa [#allocation4], 0 }
  0x15   :  { %27 = vsyncpa [#allocation4 + $0x1], 0  ;;  %s2318_s21 = smov 0   ;;  %s2320_s22 = smov 0  }
  0x16   :  { %s2322_s23 = smov 0   ;;  %s2324_s24 = smov 0  }
  0x17   :  { %s2326_s25 = smov 0   ;;  %s2328_s26 = smov 0  }
  0x18   :  { %s2330_s27 = smov 0   ;;  %s2332_s28 = smov 0  }
  0x19   :  { %s2334_s29 = smov 0   ;;  %s2336_s30 = smov 0  }
  0x1a LB: > { %2917 = sst [smem:[#allocation20_spill]] %s2213_s24  ;;  %s2239_s13 = smov [#allocation7]   ;;  %s2237_s30 = sphi %s2336_s30, %s2971_s30   ;;  %s2233_s29 = sphi %s2334_s29, %s2970_s29   ;;  %s2229_s28 = sphi %s2332_s28, %s2969_s28   ;;  %s2225_s27 = sphi %s2330_s27, %s2968_s27   ;;  %s2221_s26 = sphi %s2328_s26, %s2967_s26   ;;  %s2217_s25 = sphi %s2326_s25, %s2966_s25   ;;  %s2213_s24 = sphi %s2324_s24, %s2965_s24   ;;  %s2209_s23 = sphi %s2322_s23, %s2964_s23   ;;  %s2205_s22 = sphi %s2320_s22, %s2963_s22   ;;  %s2201_s21 = sphi %s2318_s21, %s2962_s21  }
  0x1b   : > { %s348_s14 = sshll.u32 %s2239_s13, 4  ;;  %s2369_s15 = sadd.s32 4294967295, %s2237_s30   ;;  %s2375_s14 = int_to_ptr.vmem [resolvable:$true] %s348_s14 }
  0x1c   : > { %p1365_p0 = scmp.ge.s32.totalorder %s2237_s30, 1  ;;  %p2898_p1 = scmp.eq.s32.totalorder %s2369_s15, 0 }
  0x1d   : > { %p336_p3 = scmp.lt.s32.totalorder %s2237_s30, 3  ;;  %s2240_s17 = smov [#allocation8]  }
  0x1e   : > { %s370_s18 = sshll.u32 %s2240_s17, 4  ;;  %s2241_s20 = smov [#allocation10]   ;;  %s2384_s18 = int_to_ptr.vmem [resolvable:$true] %s370_s18 }
  0x1f   : > { %p2377_p4 = pnand %p1365_p0, %p336_p3  ;;  %s383_s13 = sshll.u32 %s2241_s20, 4  ;;  %s2392_s13 = int_to_ptr.vmem [resolvable:$true] %s383_s13 }
  0x20   : > { %s2921_s2 = sld [smem:[#allocation24_spill]] }
  0x21   : > { %s2918_s16 = scalar_select %p2377_p4, 1, 0 }
  0x22   : > { %p1798_p6 = pneg %p2377_p4 }
  0x23   : > { %2919 = sst [smem:[#allocation21_spill]] %s2918_s16 }
  0x24   : > { %p2388_p7 = pnand %p1798_p6, %p2898_p1 }
  0x26   : > { %s1935_s9 = scalar_lea.hbm %s2921_s2, 4096  ;;  %p2402_p9 = pneg %p2388_p7 }
  0x27   : > { %p1936_p8 = scmp.ne.s32.totalorder %s2921_s2, %s1935_s9  ;;  %p1942_p12 = scmp.lt.u32.totalorder %s1935_s9, %s2921_s2 }
  0x29   : > { %p1938_p10 = pnand %p2402_p9, %p1936_p8 }
  0x2b   : > { %p1939_p11 = pneg %p1938_p10 }
  0x2d   : > { %p1944_p13 = pnand %p1942_p12, %p1939_p11 }
  0x2f   : > { %1947 = shalt.err (!%p1944_p13)
}
  0x30   : > { %s1948_s5 = scalar_lea.vmem %s2375_s14, 4096  ;;  %p1956_p5 = scmp.lt.s32.totalorder %s2375_s14, %s2375_s14 }
  0x31   : > { %p1949_p0 = scmp.ne.s32.totalorder %s2375_s14, %s1948_s5  ;;  %p1957_p2 = scmp.lt.s32.totalorder %s1948_s5, %s1948_s5 }
  0x33   : > { %p1951_p3 = pnand %p1949_p0, %p2402_p9  ;;  %p1958_p8 = por %p1957_p2, %p1956_p5 }
  0x35   : > { %p1952_p6 = pneg %p1951_p3 }
  0x37   : > { %p1959_p10 = pnand %p1958_p8, %p1952_p6 }
  0x39   : > { %1962 = shalt.err (!%p1959_p10)
}
  0x3a   : > { %s2242_s8 = smov 128   ;;  %s2243_s4 = smov 8  }
  0x3b   : > { %1801 = dma.hbm_to_vmem [thread:$0]  (!%p2388_p7), %s2921_s2, 4096, %s2375_s14, [#allocation6], %s2242_s8, %s2242_s8, %s2243_s4  }
  0x3c   : > { %s2923_s6 = sld [smem:[#allocation28_spill]] }
  0x42   : > { %s1963_s3 = scalar_lea.hbm %s2923_s6, 2048 }
  0x43   : > { %p1964_p2 = scmp.ne.s32.totalorder %s2923_s6, %s1963_s3  ;;  %p1970_p12 = scmp.lt.u32.totalorder %s1963_s3, %s2923_s6 }
  0x45   : > { %p1966_p5 = pnand %p1964_p2, %p2402_p9 }
  0x47   : > { %p1967_p11 = pneg %p1966_p5 }
  0x49   : > { %p1972_p13 = pnand %p1970_p12, %p1967_p11 }
  0x4b   : > { %1975 = shalt.err (!%p1972_p13)
}
  0x4c   : > { %s1976_s14 = scalar_lea.vmem %s2384_s18, 2048  ;;  %p1984_p8 = scmp.lt.s32.totalorder %s2384_s18, %s2384_s18 }
  0x4d   : > { %p1977_p0 = scmp.ne.s32.totalorder %s2384_s18, %s1976_s14  ;;  %p1985_p10 = scmp.lt.s32.totalorder %s1976_s14, %s1976_s14 }
  0x4f   : > { %p1979_p3 = pnand %p1977_p0, %p2402_p9  ;;  %p1986_p2 = por %p1985_p10, %p1984_p8 }
  0x51   : > { %p1980_p6 = pneg %p1979_p3 }
  0x53   : > { %p1987_p5 = pnand %p1986_p2, %p1980_p6 }
  0x55   : > { %1990 = shalt.err (!%p1987_p5)
}
  0x56   : > { %1804 = dma.hbm_to_vmem [thread:$0]  (!%p2388_p7), %s2923_s6, 2048, %s2384_s18, [#allocation9], %s2242_s8, %s2242_s8, %s2243_s4  }
  0x57   : > { %s2924_s7 = sld [smem:[#allocation29_spill]] }
  0x5d   : > { %s1991_s9 = scalar_lea.hbm %s2924_s7, 4096 }
  0x5e   : > { %p1992_p11 = scmp.ne.s32.totalorder %s2924_s7, %s1991_s9  ;;  %p1998_p0 = scmp.lt.u32.totalorder %s1991_s9, %s2924_s7 }
  0x60   : > { %p1994_p12 = pnand %p1992_p11, %p2402_p9 }
  0x62   : > { %p1995_p13 = pneg %p1994_p12 }
  0x64   : > { %p2000_p3 = pnand %p1998_p0, %p1995_p13 }
  0x66   : > { %2003 = shalt.err (!%p2000_p3)
}
  0x67   : > { %s2004_s18 = scalar_lea.vmem %s2392_s13, 4096  ;;  %p2012_p2 = scmp.lt.s32.totalorder %s2392_s13, %s2392_s13 }
  0x68   : > { %p2005_p6 = scmp.ne.s32.totalorder %s2392_s13, %s2004_s18  ;;  %p2013_p5 = scmp.lt.s32.totalorder %s2004_s18, %s2004_s18 }
  0x6a   : > { %p2007_p8 = pnand %p2005_p6, %p2402_p9  ;;  %p2014_p11 = por %p2013_p5, %p2012_p2 }
  0x6c   : > { %p2008_p10 = pneg %p2007_p8 }
  0x6e   : > { %p2015_p12 = pnand %p2014_p11, %p2008_p10 }
  0x70   : > { %2018 = shalt.err (!%p2015_p12)
}
  0x71   : > { %s2244_s8 = smov 256   ;;  %s2245_s4 = smov 16  }
  0x72   : > { %1807 = dma.hbm_to_vmem [thread:$0]  (!%p2388_p7), %s2924_s7, 4096, %s2392_s13, [#allocation9], %s2244_s8, %s2244_s8, %s2245_s4  }
  0x73   : > { %s2246_s3 = smov [#allocation11]   ;;  %s2925_s11 = sld [smem:[#allocation33_spill]] }
  0x74   : > { %s405_s24 = sshll.u32 %s2246_s3, 4  ;;  %s406_s24 = int_to_ptr.vmem [resolvable:$true] %s405_s24 }
  0x79   : > { %s2019_s10 = scalar_lea.hbm %s2925_s11, 8192 }
  0x7a   : > { %p2020_p13 = scmp.ne.s32.totalorder %s2925_s11, %s2019_s10  ;;  %p2026_p6 = scmp.lt.u32.totalorder %s2019_s10, %s2925_s11 }
  0x7c   : > { %p2022_p0 = pnand %p2020_p13, %p2402_p9 }
  0x7e   : > { %p2023_p3 = pneg %p2022_p0 }
  0x80   : > { %p2028_p8 = pnand %p2026_p6, %p2023_p3 }
  0x82   : > { %2031 = shalt.err (!%p2028_p8)
}
  0x83   : > { %s2032_s13 = scalar_lea.vmem %s406_s24, 8192  ;;  %p2040_p11 = scmp.lt.s32.totalorder %s406_s24, %s406_s24 }
  0x84   : > { %p2033_p10 = scmp.ne.s32.totalorder %s406_s24, %s2032_s13  ;;  %p2041_p12 = scmp.lt.s32.totalorder %s2032_s13, %s2032_s13 }
  0x86   : > { %p2035_p2 = pnand %p2033_p10, %p2402_p9  ;;  %p2042_p1 = por %p2041_p12, %p2040_p11 }
  0x88   : > { %p2036_p5 = pneg %p2035_p2 }
  0x8a   : > { %p2043_p4 = pnand %p2042_p1, %p2036_p5 }
  0x8c   : > { %2046 = shalt.err (!%p2043_p4)
}
  0x8d   : > { %1810 = dma.hbm_to_vmem [thread:$0]  (!%p2388_p7), %s2925_s11, 8192, %s406_s24, [#allocation12], %s2244_s8, %s2244_s8, %s2245_s4  }
  0x8e   : > { %s1362_s17 = sadd.s32 4294967294, %s2237_s30   ;;  %s2489_s19 = sadd.s32 1, %s2237_s30  }
  0x8f   : > { %p37_p1 = scmp.lt.s32.totalorder %s2237_s30, 0  ;;  %p39_p4 = scmp.lt.s32.totalorder %s2489_s19, 0 }
  0x90   : > { %s44_s3 = sadd.s32 1, %s2233_s29  ;;  %p51_p7 = scmp.ne.s32.totalorder %s2233_s29, %s2229_s28 }
  0x91   : > { %s38_s16 = scalar_select %p37_p1, %s2237_s30, 0 }
  0x92   : > { %s40_s9 = scalar_select %p39_p4, %s2489_s19, 0 }
  0x93   : > { %p2901_p9 = scmp.eq.s32.totalorder %s2237_s30, 0  ;;  %p57_p13 = scmp.ne.s32.totalorder %s2229_s28, %s2225_s27 }
  0x94   : > { %s41_s8 = ssub.s32 %s38_s16, %s40_s9  ;;  %p2927_p6 = scmp.eq.s32.totalorder %s2369_s15, 0 }
  0x95   : > { %p42_p0 = scmp.eq.s32.totalorder %s41_s8, 0  ;;  %p2503_p3 = por %p2901_p9, %p51_p7 }
  0x96   : > { %p2509_p8 = por %p2927_p6, %p57_p13  ;;  %s309_s10 = ssub.s32 %s2237_s30, %s2489_s19 }
  0x97   : > { %s2516_s12 = scalar_select %p42_p0, %s2233_s29, %s44_s3  }
  0x98   : > { %p310_p10 = scmp.eq.s32.totalorder %s309_s10, 0  ;;  %s312_s20 = sadd.s32 1, %s2209_s23 }
  0x99   : > { %p322_p2 = scmp.ne.s32.totalorder %s2209_s23, %s2205_s22  ;;  %p328_p5 = scmp.ne.s32.totalorder %s2205_s22, %s2201_s21 }
  0x9a   : > { %s2524_s27 = scalar_select %p310_p10, %s2209_s23, %s312_s20  }
  0x9b   : > { %p2929_p11 = scmp.eq.s32.totalorder %s2369_s15, 1  ;;  %p329_p1 = scmp.eq.s32.totalorder %s1362_s17, 1 }
  0x9c   : > { %p2900_p4 = scmp.lt.s32.totalorder %s2237_s30, 2  ;;  %s419_s18 = sand.u32 1, %s2233_s29  }
  0x9d   : > { %p2528_p12 = por %p2929_p11, %p322_p2  ;;  %p2534_p7 = por %p329_p1, %p328_p5 }
  0x9e   : > { %s1371_s14 = sshll.u32 %s419_s18, 4  ;;  %s1394_s1 = sshll.u32 %s38_s16, 8 }
  0x9f   : > { %s2930_s5 = scalar_select %p2528_p12, 1, 0 }
  0xa0   : > { %s2931_s13 = scalar_select %p2534_p7, 1, 0 }
  0xa1   : > { %s2932_s0 = sld [smem:[#allocation22_spill]]  ;;  %s423_s10 = scalar_lea.vmem [#allocation2], %s1371_s14 }
  0xa2   : > { %s433_s20 = sshll.u32 %s423_s10, 4  ;;  %p2547_p13 = pnand %p2900_p4, %p2503_p3  ;;  %s2551_s20 = int_to_ptr.vmem [resolvable:$true] %s433_s20 }
  0xa3   : > { %s420_s16 = scalar_lea.sflag [#allocation3], %s419_s18 }
  0xa4   : > { %p2049_p6 = pneg %p2547_p13 }
  0xa7   : > { %s2541_s8 = scalar_lea.hbm %s2932_s0, %s1394_s1  ;;  %s2052_s1 = scalar_lea.hbm %s2932_s0, 256 }
  0xa8   : > { %s2047_s3 = scalar_lea.hbm %s2541_s8, 256  ;;  %p2053_p3 = scmp.lt.u32.totalorder %s2541_s8, %s2932_s0 }
  0xa9   : > { %p2048_p0 = scmp.ne.s32.totalorder %s2541_s8, %s2047_s3  ;;  %p2054_p5 = scmp.lt.u32.totalorder %s2052_s1, %s2047_s3 }
  0xaa   : > { %p2056_p1 = scmp.lt.u32.totalorder %s2047_s3, %s2541_s8 }
  0xab   : > { %p2050_p10 = pnand %p2049_p6, %p2048_p0  ;;  %p2055_p11 = por %p2054_p5, %p2053_p3 }
  0xad   : > { %p2051_p2 = pneg %p2050_p10  ;;  %p2057_p4 = por %p2056_p1, %p2055_p11 }
  0xaf   : > { %p2058_p9 = pnand %p2057_p4, %p2051_p2 }
  0xb1   : > { %2061 = shalt.err (!%p2058_p9)
}
  0xb2   : > { %s2062_s18 = scalar_lea.vmem %s2551_s20, 256  ;;  %s2247_s14 = smov [#allocation2]  }
  0xb3   : > { %p2063_p0 = scmp.ne.s32.totalorder %s2551_s20, %s2062_s18  ;;  %s2067_s4 = sshll.u32 %s2247_s14, 4  ;;  %s2068_s4 = int_to_ptr.vmem [resolvable:$false] %s2067_s4 }
  0xb4   : > { %s2069_s9 = scalar_lea.vmem %s2068_s4, 512  ;;  %p2070_p12 = scmp.lt.s32.totalorder %s2551_s20, %s2068_s4 }
  0xb5   : > { %p2065_p10 = pnand %p2063_p0, %p2049_p6  ;;  %p2071_p3 = scmp.lt.s32.totalorder %s2069_s9, %s2062_s18 }
  0xb7   : > { %p2066_p7 = pneg %p2065_p10  ;;  %p2072_p5 = por %p2071_p3, %p2070_p12 }
  0xb9   : > { %p2073_p11 = pnand %p2072_p5, %p2066_p7 }
  0xbb   : > { %2076 = shalt.err (!%p2073_p11)
}
  0xbc   : > { %s2934_s3 = sld [smem:[#allocation20_spill]]  ;;  %p68_p9 = scmp.gt.s32.totalorder %s2369_s15, 0 }
  0xbd   : > { %1814 = dma.hbm_to_vmem [thread:$0]  (!%p2547_p13), %s2541_s8, 256, %s2551_s20, %s420_s16  }
  0xbe   : > { %s1364_s1 = sadd.s32 4294967295, %s2489_s19  ;;  %s76_s17 = sadd.s32 1, %s2221_s26 }
  0xbf   : > { %p71_p12 = scmp.gt.s32.totalorder %s1364_s1, 0  ;;  %p83_p4 = scmp.ne.s32.totalorder %s2221_s26, %s2217_s25 }
  0xc0   : > { %s69_s10 = scalar_select %p68_p9, %s2369_s15, 0 }
  0xc1   : > { %s2973_s1 = smov (!%p71_p12, %s1364_s1), 0  ;;  %s440_s14 = sand.u32 1, %s2237_s30  }
  0xc2   : > { %p89_p7 = scmp.ne.s32.totalorder %s2217_s25, %s2934_s3  ;;  %s73_s18 = ssub.s32 %s69_s10, %s2973_s1 }
  0xc3   : > { %p74_p6 = scmp.eq.s32.totalorder %s73_s18, 0  ;;  %p2935_p2 = scmp.eq.s32.totalorder %s2237_s30, 0 }
  0xc4   : > { %p2936_p0 = scmp.eq.s32.totalorder %s2369_s15, 0  ;;  %s442_s20 = sand.u32 1, %s2221_s26  }
  0xc5   : > { %p85_p1 = por %p83_p4, %p2935_p2  ;;  %s1395_s16 = sshll.u32 %s69_s10, 8 }
  0xc6   : > { %p2591_p10 = por %p89_p7, %p2936_p0  ;;  %s1374_s9 = sshll.u32 %s442_s20, 4 }
  0xc7   : > { %s2596_s8 = scalar_select %p74_p6, %s2221_s26, %s76_s17  }
  0xc8   : > { %s2937_s4 = scalar_select %p2591_p10, 1, 0 }
  0xc9   : > { %s2938_s6 = sld [smem:[#allocation23_spill]]  ;;  %p2939_p13 = scmp.lt.s32.totalorder %s2237_s30, 2 }
  0xca   : > { %s444_s1 = scalar_lea.vmem [#allocation5], %s1374_s9  ;;  %s441_s10 = scalar_lea.sflag [#allocation6], %s440_s14 }
  0xcb   : > { %p2606_p3 = pnand %p2939_p13, %p85_p1  ;;  %s455_s17 = sshll.u32 %s444_s1, 4  ;;  %s2610_s17 = int_to_ptr.vmem [resolvable:$true] %s455_s17 }
  0xcd   : > { %p2079_p11 = pneg %p2606_p3 }
  0xcf   : > { %s2602_s7 = scalar_lea.hbm %s2938_s6, %s1395_s16  ;;  %s2082_s20 = scalar_lea.hbm %s2938_s6, 256 }
  0xd0   : > { %s2077_s18 = scalar_lea.hbm %s2602_s7, 256  ;;  %p2083_p4 = scmp.lt.u32.totalorder %s2602_s7, %s2938_s6 }
  0xd1   : > { %p2078_p5 = scmp.ne.s32.totalorder %s2602_s7, %s2077_s18  ;;  %p2084_p7 = scmp.lt.u32.totalorder %s2082_s20, %s2077_s18 }
  0xd2   : > { %p2086_p2 = scmp.lt.u32.totalorder %s2077_s18, %s2602_s7 }
  0xd3   : > { %p2080_p9 = pnand %p2079_p11, %p2078_p5  ;;  %p2085_p6 = por %p2084_p7, %p2083_p4 }
  0xd5   : > { %p2081_p12 = pneg %p2080_p9  ;;  %p2087_p1 = por %p2086_p2, %p2085_p6 }
  0xd7   : > { %p2088_p0 = pnand %p2087_p1, %p2081_p12 }
  0xd9   : > { %2091 = shalt.err (!%p2088_p0)
}
  0xda   : > { %s2092_s14 = scalar_lea.vmem %s2610_s17, 256  ;;  %s2248_s9 = smov [#allocation5]  }
  0xdb   : > { %p2093_p13 = scmp.ne.s32.totalorder %s2610_s17, %s2092_s14  ;;  %s2097_s1 = sshll.u32 %s2248_s9, 4  ;;  %s2098_s1 = int_to_ptr.vmem [resolvable:$false] %s2097_s1 }
  0xdc   : > { %s2099_s11 = scalar_lea.vmem %s2098_s1, 512  ;;  %p2100_p10 = scmp.lt.s32.totalorder %s2610_s17, %s2098_s1 }
  0xdd   : > { %p2095_p5 = pnand %p2093_p13, %p2079_p11  ;;  %p2101_p4 = scmp.lt.s32.totalorder %s2099_s11, %s2092_s14 }
  0xdf   : > { %p2096_p9 = pneg %p2095_p5  ;;  %p2102_p7 = por %p2101_p4, %p2100_p10 }
  0xe1   : > { %p2103_p6 = pnand %p2102_p7, %p2096_p9 }
  0xe3   : > { %2106 = shalt.err (!%p2103_p6)
}
  0xe4   : > { %1817 = dma.hbm_to_vmem [thread:$0]  (!%p2606_p3), %s2602_s7, 256, %s2610_s17, %s441_s10  }
  0xe5   : > { %s2941_s18 = sld [smem:[#allocation21_spill]] }
  0xeb   : > { %p2942_p12 = scmp.ne.s32.totalorder %s2941_s18, 0 }
  0xec   : > { %s466_s0 = sand.u32 (!%p2942_p12), 1, %s2229_s28  }
  0xed   : > { %464 = sbr.rel (%p2942_p12) target bundleno = 1673 (0x689), region = 68  ;;  %s2640_s2 = sshll.u32 (!%p2942_p12), %s466_s0, 4 }
  0xee   : > { %s467_s20 = scalar_lea.sflag (!%p2942_p12), [#allocation3], %s466_s0  ;;  %s470_s16 = scalar_lea.vmem (!%p2942_p12), [#allocation2], %s2640_s2 }
  0xf4   : > { %2176 = dma.done.wait (%p2509_p8), %s467_s20, 256  }
  0xf5   : > { %2178 = vsyncadd (%p2509_p8), %s467_s20, 4294967040  ;;  %s475_s7 = sand.u32 1, %s2369_s15   ;;  %s477_s3 = sand.u32 1, %s2217_s25  }
  0xf6   : > { %s2649_s17 = sshll.u32 %s477_s3, 4  ;;  %s476_s10 = scalar_lea.sflag [#allocation6], %s475_s7 }
  0xf7   : > { %s479_s14 = scalar_lea.vmem [#allocation5], %s2649_s17  ;;  %p2943_p10 = scmp.ne.s32.totalorder %s2937_s4, 0 }
  0xf9   : > { %2180 = dma.done.wait (%p2943_p10), %s476_s10, 256  }
  0xfa   : > { %2182 = vsyncadd (%p2943_p10), %s476_s10, 4294967040  ;;  %p2944_p3 = scmp.eq.s32.totalorder %s2369_s15, 0 }
  0xfc   : > { %2184 = dma.done.wait (%p2944_p3), [#allocation6], 4096   ;;  %p2945_p8 = pmov %p2944_p3 }
  0xfd   : > { %p2946_p11 = pmov %p2944_p3 }
  0xfe   : > { %2186 = vsyncadd (%p2945_p8), [#allocation6], 4294963200 }
  0xff   : > { %2188 = dma.done.wait (%p2946_p11), [#allocation9], 6144   ;;  %p2947_p2 = pmov %p2944_p3 }
 0x101   : > { %2190 = vsyncadd (%p2947_p2), [#allocation9], 4294961152  ;;  %p2948_p1 = pmov %p2947_p2 }
 0x103   : > { %2192 = dma.done.wait (%p2948_p1), [#allocation12], 8192   ;;  %p2949_p0 = pmov %p2948_p1 }
 0x104   : > { %v2249_v0 = vmov 0.0|0.0   ;;  %p626_p13 = scmp.lt.s32.totalorder %s2369_s15, 1  ;;  %v652_v1 = vld [vmem:[#allocation7 + $0x80] sm:$0xff]  ;;  %v653_v2 = vld [vmem:[#allocation7 + $0x88] sm:$0xff]  ;;  %v654_v6 = vld [vmem:[#allocation7 + $0x90] sm:$0xff]  ;;  %vm2250_vm1 = vmmov 0  }
 0x105   : > { %2194 = vsyncadd (%p2949_p0), [#allocation12], 4294959104  ;;  %1568 = vmatprep.subr.bf16.mxu1 %v2249_v0  ;;  %v636_v3 = vld [vmem:[#allocation7] sm:$0xff]  ;;  %v1536_v4 = vpack.c.bf16 %v653_v2, %v652_v1  ;;  %v637_v5 = vld [vmem:[#allocation7 + $0x8] sm:$0xff]  ;;  %s2952_s1 = sld [smem:[#allocation25_spill]]  ;;  %s2953_s0 = sld [smem:[#allocation26_spill]] }
 0x106   : > { %v655_v7 = vld [vmem:[#allocation7 + $0x98] sm:$0xff]  ;;  %v1538_v8 = vpack.c.bf16 %v637_v5, %v636_v3  ;;  %v638_v10 = vld [vmem:[#allocation7 + $0x10] sm:$0xff]  ;;  %v656_v12 = vld [vmem:[#allocation7 + $0xa0] sm:$0xff]  ;;  %s631_s24 = scalar_select %p626_p13, 1, 0 }
 0x107   : > { %v1540_v9 = vpack.c.bf16 %v655_v7, %v654_v6  ;;  %v639_v11 = vld [vmem:[#allocation7 + $0x18] sm:$0xff]  ;;  %1537 = vmatprep.subr.bf16.mxu0 %v1536_v4  ;;  %v657_v13 = vld [vmem:[#allocation7 + $0xa8] sm:$0xff]  ;;  %v640_v16 = vld [vmem:[#allocation7 + $0x20] sm:$0xff]  ;;  %s2955_s17 = sld [smem:[#allocation30_spill]]  ;;  %s538_s11 = sand.u32 1, %s2205_s22  }
 0x108   : > { %1539 = vmatpush3.bf16.msra.mxu0 %v1538_v8  ;;  %v1542_v14 = vpack.c.bf16 %v639_v11, %v638_v10  ;;  %v1544_v15 = vpack.c.bf16 %v657_v13, %v656_v12  ;;  %v641_v17 = vld [vmem:[#allocation7 + $0x28] sm:$0xff]  ;;  %v658_v18 = vld [vmem:[#allocation7 + $0xb0] sm:$0xff]  ;;  %v659_v19 = vld [vmem:[#allocation7 + $0xb8] sm:$0xff]  ;;  %v632_v20 = vstv %s631_s24  ;;  %s2956_s24 = sld [smem:[#allocation31_spill]]  ;;  %s1385_s18 = sshll.u32 %s538_s11, 4 }
 0x109   : > { %1541 = vmatprep.subr.bf16.mxu0 %v1540_v9  ;;  %v1546_v21 = vpack.c.bf16 %v641_v17, %v640_v16  ;;  %v1548_v22 = vpack.c.bf16 %v659_v19, %v658_v18  ;;  %v642_v23 = vld [vmem:[#allocation7 + $0x30] sm:$0xff]  ;;  %v643_v24 = vld [vmem:[#allocation7 + $0x38] sm:$0xff]  ;;  %vm2670_vm0 = vcmp.eq.s32.totalorder %v632_v20, 1  ;;  %v660_v26 = vld [vmem:[#allocation7 + $0xc0] sm:$0xff]  ;;  %v2251_v18 = vmov 0.0   ;;  %s540_s2 = scalar_lea.vmem [#allocation13], %s1385_s18 }
 0x10a   : > { %v661_v27 = vld [vmem:[#allocation7 + $0xc8] sm:$0xff]  ;;  %v1550_v30 = vpack.c.bf16 %v643_v24, %v642_v23  ;;  %v546_v32 = vld [vmem:[#allocation8] sm:$0xff]  ;;  %v548_v34 = vld [vmem:[#allocation8 + $0x10] sm:$0xff]  ;;  %1498 = vmatprep.mubr.msk.f32.mxu1 %vm2250_vm1, %v2251_v18  ;;  %s1231_s20 = sshll.u32 %s540_s2, 4  ;;  %s2958_s3 = sld [smem:[#allocation34_spill]]  ;;  %s2823_s20 = int_to_ptr.vmem [resolvable:$true] %s1231_s20 }
 0x10b   : > { %v628_v28 = vld [vmem:[%s470_s16 + $0x8] sm:$0xff]  ;;  %v1552_v35 = vpack.c.bf16 %v661_v27, %v660_v26  ;;  %v644_v36 = vld [vmem:[#allocation7 + $0x40] sm:$0xff]  ;;  %v662_v40 = vld [vmem:[#allocation7 + $0xd0] sm:$0xff]  ;;  %s1217_s10 = scalar_lea.sflag [#allocation4], %s538_s11  ;;  %p2959_p9 = scmp.ne.s32.totalorder %s2930_s5, 0 }
 0x10c   : > { %1543 = vmatpush3.bf16.msra.mxu0 %v1542_v14  ;;  %v630_v29 = vld [vmem:[%s479_s14 + $0x8] sm:$0xff]  ;;  %v550_v44 = vld [vmem:[#allocation8 + $0x20] sm:$0xff]  ;;  %v646_v47 = vld [vmem:[#allocation7 + $0x50] sm:$0xff] }
 0x10d   : > { %1545 = vmatprep.subr.bf16.mxu0 %v1544_v15  ;;  %v635_v31 = vsel %vm2670_vm0, %v628_v28, %v630_v29  ;;  %v547_v33 = vld [vmem:[#allocation8 + $0x8] sm:$0xff]  ;;  %v549_v39 = vld [vmem:[#allocation8 + $0x18] sm:$0xff]  ;;  %v664_v49 = vld [vmem:[#allocation7 + $0xe0] sm:$0xff] }
 0x10e   : > { %v645_v37 = vld [vmem:[#allocation7 + $0x48] sm:$0xff]  ;;  %739 = vmatprep.mubr.f32.mxu0 %v635_v31  ;;  %v1569_v38 = vpack.c.bf16 %v547_v33, %v546_v32  ;;  %v663_v41 = vld [vmem:[#allocation7 + $0xd8] sm:$0xff]  ;;  %v1572_v42 = vpack.c.bf16 %v549_v39, %v548_v34  ;;  %v552_v53 = vld [vmem:[#allocation8 + $0x30] sm:$0xff] }
 0x10f   : > { %v1554_v43 = vpack.c.bf16 %v645_v37, %v644_v36  ;;  %v551_v45 = vld [vmem:[#allocation8 + $0x28] sm:$0xff]  ;;  %v1556_v46 = vpack.c.bf16 %v663_v41, %v662_v40  ;;  %v647_v48 = vld [vmem:[#allocation7 + $0x58] sm:$0xff]  ;;  %v648_v56 = vld [vmem:[#allocation7 + $0x60] sm:$0xff] }
 0x110   : > { %1547 = vmatpush3.bf16.msra.mxu0 %v1546_v21  ;;  %1570 = vmatpush3.bf16.msra.mxu1 %v1569_v38  ;;  %v665_v50 = vld [vmem:[#allocation7 + $0xe8] sm:$0xff]  ;;  %v1575_v51 = vpack.c.bf16 %v551_v45, %v550_v44  ;;  %v1558_v52 = vpack.c.bf16 %v647_v48, %v646_v47  ;;  %v553_v54 = vld [vmem:[#allocation8 + $0x38] sm:$0xff]  ;;  %v666_v58 = vld [vmem:[#allocation7 + $0xf0] sm:$0xff] }
 0x111   : > { %1549 = vmatprep.subr.bf16.mxu0 %v1548_v22  ;;  %1571 = vmatprep.subr.bf16.mxu1 %v2249_v0  ;;  %v1560_v55 = vpack.c.bf16 %v665_v50, %v664_v49  ;;  %v649_v57 = vld [vmem:[#allocation7 + $0x68] sm:$0xff]  ;;  %v667_v59 = vld [vmem:[#allocation7 + $0xf8] sm:$0xff]  ;;  %v1578_v60 = vpack.c.bf16 %v553_v54, %v552_v53  ;;  %v554_v62 = vld [vmem:[#allocation8 + $0x40] sm:$0xff] }
 0x112   : > { %v1562_v61 = vpack.c.bf16 %v649_v57, %v648_v56  ;;  %v555_v63 = vld [vmem:[#allocation8 + $0x48] sm:$0xff]  ;;  %v1564_v1 = vpack.c.bf16 %v667_v59, %v666_v58  ;;  %v650_v2 = vld [vmem:[#allocation7 + $0x70] sm:$0xff]  ;;  %v651_v3 = vld [vmem:[#allocation7 + $0x78] sm:$0xff] }
 0x113   : > { %v1581_v4 = vpack.c.bf16 %v555_v63, %v554_v62  ;;  %v1566_v5 = vpack.c.bf16 %v651_v3, %v650_v2  ;;  %v556_v6 = vld [vmem:[#allocation8 + $0x50] sm:$0xff]  ;;  %v557_v7 = vld [vmem:[#allocation8 + $0x58] sm:$0xff]  ;;  %v558_v12 = vld [vmem:[#allocation8 + $0x60] sm:$0xff] }
 0x114   : > { %1551 = vmatpush3.bf16.msra.mxu0 %v1550_v30  ;;  %1573 = vmatpush3.bf16.msra.mxu1 %v1572_v42  ;;  %v627_v8 = vld [vmem:[%s470_s16] sm:$0xff]  ;;  %v1584_v10 = vpack.c.bf16 %v557_v7, %v556_v6  ;;  %v559_v13 = vld [vmem:[#allocation8 + $0x68] sm:$0xff]  ;;  %v561_v16 = vld [vmem:[#allocation8 + $0x78] sm:$0xff]  ;;  %s2954_s16 = sld [smem:[#allocation27_spill]] }
 0x115   : > { %1553 = vmatprep.subr.bf16.mxu0 %v1552_v35  ;;  %1574 = vmatprep.subr.bf16.mxu1 %v2249_v0  ;;  %v629_v9 = vld [vmem:[%s479_s14] sm:$0xff]  ;;  %v1587_v14 = vpack.c.bf16 %v559_v13, %v558_v12  ;;  %v912_v27 = vld [vmem:[#allocation10 + $0x8] sm:$0xff]  ;;  %v914_v28 = vld [vmem:[#allocation10 + $0x18] sm:$0xff]  ;;  %s2252_s14 = smov [#allocation13]  }
 0x116   : > { %v634_v11 = vsel %vm2670_vm0, %v627_v8, %v629_v9  ;;  %v560_v15 = vld [vmem:[#allocation8 + $0x70] sm:$0xff]  ;;  %v1386_v20 = vld [vmem:[%s2952_s1] ss:$0 sm:$0xff]  ;;  %v1616_v29 = vpack.c.bf16 %v914_v28, %v912_v27  ;;  %v916_v33 = vld [vmem:[#allocation10 + $0x28] sm:$0xff]  ;;  %s2957_s1 = sld [smem:[#allocation32_spill]] }
 0x117   : > { %v1590_v17 = vpack.c.bf16 %v561_v16, %v560_v15  ;;  %v911_v30 = vld [vmem:[#allocation10] sm:$0xff]  ;;  %v913_v31 = vld [vmem:[#allocation10 + $0x10] sm:$0xff]  ;;  %v918_v34 = vld [vmem:[#allocation10 + $0x38] sm:$0xff] }
 0x118   : > { %1555 = vmatpush3.bf16.msra.mxu0 %v1554_v43  ;;  %1576 = vmatpush3.bf16.msra.mxu1 %v1575_v51  ;;  %v1618_v32 = vpack.c.bf16 %v913_v31, %v911_v30  ;;  %v1620_v35 = vpack.c.bf16 %v918_v34, %v916_v33  ;;  %v915_v36 = vld [vmem:[#allocation10 + $0x20] sm:$0xff]  ;;  %v917_v37 = vld [vmem:[#allocation10 + $0x30] sm:$0xff]  ;;  %v920_v39 = vld [vmem:[#allocation10 + $0x48] sm:$0xff] }
 0x119   : > { %1557 = vmatprep.subr.bf16.mxu0 %v1556_v46  ;;  %1577 = vmatprep.subr.bf16.mxu1 %v2249_v0  ;;  %v922_v40 = vld [vmem:[#allocation10 + $0x58] sm:$0xff]  ;;  %v921_v43 = vld [vmem:[#allocation10 + $0x50] sm:$0xff]  ;;  %v924_v45 = vld [vmem:[#allocation10 + $0x68] sm:$0xff] }
 0x11a   : > { %v1624_v41 = vpack.c.bf16 %v922_v40, %v920_v39  ;;  %v926_v46 = vld [vmem:[#allocation10 + $0x78] sm:$0xff]  ;;  %v923_v47 = vld [vmem:[#allocation10 + $0x60] sm:$0xff]  ;;  %v925_v49 = vld [vmem:[#allocation10 + $0x70] sm:$0xff] }
 0x11b   : > { %v1628_v48 = vpack.c.bf16 %v926_v46, %v924_v45  ;;  %v928_v50 = vld [vmem:[#allocation10 + $0x88] sm:$0xff]  ;;  %v927_v54 = vld [vmem:[#allocation10 + $0x80] sm:$0xff]  ;;  %v934_v57 = vld [vmem:[#allocation10 + $0xb8] sm:$0xff] }
 0x11c   : > { %1559 = vmatpush3.bf16.msra.mxu0 %v1558_v52  ;;  %1579 = vmatpush3.bf16.msra.mxu1 %v1578_v60  ;;  %v1630_v52 = vpack.c.bf16 %v925_v49, %v923_v47  ;;  %v932_v56 = vld [vmem:[#allocation10 + $0xa8] sm:$0xff]  ;;  %v938_v63 = vld [vmem:[#allocation10 + $0xd8] sm:$0xff]  ;;  %v935_v3 = vld [vmem:[#allocation10 + $0xc0] sm:$0xff] }
 0x11d   : > { %1561 = vmatprep.subr.bf16.mxu0 %v1560_v55  ;;  %1580 = vmatprep.subr.bf16.mxu1 %v2249_v0  ;;  %v929_v55 = vld [vmem:[#allocation10 + $0x90] sm:$0xff]  ;;  %v1636_v59 = vpack.c.bf16 %v934_v57, %v932_v56  ;;  %v936_v62 = vld [vmem:[#allocation10 + $0xc8] sm:$0xff]  ;;  %v942_v6 = vld [vmem:[#allocation10 + $0xf8] sm:$0xff] }
 0x11e   : > { %v1634_v58 = vpack.c.bf16 %v929_v55, %v927_v54  ;;  %v1640_v2 = vpack.c.bf16 %v938_v63, %v936_v62  ;;  %v939_v9 = vld [vmem:[#allocation10 + $0xe0] sm:$0xff]  ;;  %v563_v12 = vld [vmem:[#allocation11 + $0x8] sm:$0xff]  ;;  %v565_v13 = vld [vmem:[#allocation11 + $0x18] sm:$0xff] }
 0x11f   : > { %v1648_v15 = vpack.c.bf16 %v565_v13, %v563_v12  ;;  %v564_v16 = vld [vmem:[#allocation11 + $0x10] sm:$0xff]  ;;  %v570_v27 = vld [vmem:[#allocation11 + $0x40] sm:$0xff]  ;;  %v577_v30 = vld [vmem:[#allocation11 + $0x78] sm:$0xff] }
 0x120   : > { %1563 = vmatpush3.bf16.msra.mxu0 %v1562_v61  ;;  %1582 = vmatpush3.bf16.msra.mxu1 %v1581_v4  ;;  %v933_v61 = vld [vmem:[#allocation10 + $0xb0] sm:$0xff]  ;;  %v574_v33 = vld [vmem:[#allocation11 + $0x60] sm:$0xff]  ;;  %v587_v47 = vld [vmem:[#allocation11 + $0xc8] sm:$0xff] }
 0x121   : > { %1565 = vmatprep.subr.bf16.mxu0 %v1564_v1  ;;  %1583 = vmatprep.subr.bf16.mxu1 %v2249_v0  ;;  %v572_v28 = vld [vmem:[#allocation11 + $0x50] sm:$0xff]  ;;  %v578_v39 = vld [vmem:[#allocation11 + $0x80] sm:$0xff]  ;;  %v593_v54 = vld [vmem:[#allocation11 + $0xf8] sm:$0xff] }
 0x122   : > { %v2719_v31 = vpack.c.bf16 %v572_v28, %v570_v27  ;;  %v576_v34 = vld [vmem:[#allocation11 + $0x70] sm:$0xff]  ;;  %v582_v45 = vld [vmem:[#allocation11 + $0xa0] sm:$0xff] }
 0x123   : > { %v580_v40 = vld [vmem:[#allocation11 + $0x90] sm:$0xff]  ;;  %v590_v57 = vld [vmem:[#allocation11 + $0xe0] sm:$0xff] }
 0x124   : > { %1567 = vmatpush3.bf16.msra.mxu0 %v1566_v5  ;;  %1585 = vmatpush3.bf16.msra.mxu1 %v1584_v10  ;;  %v940_v5 = vld [vmem:[#allocation10 + $0xe8] sm:$0xff]  ;;  %v584_v46 = vld [vmem:[#allocation11 + $0xb0] sm:$0xff]  ;;  %v594_v63 = vld [vmem:[#allocation11 + $0x100] sm:$0xff] }
 0x125   : > { %1592 = vmatprep.subr.bf16.mxu0 %v2249_v0  ;;  %1586 = vmatprep.subr.bf16.mxu1 %v2249_v0  ;;  %v1644_v8 = vpack.c.bf16 %v942_v6, %v940_v5  ;;  %v2737_v49 = vpack.c.bf16 %v584_v46, %v582_v45  ;;  %v598_v6 = vld [vmem:[#allocation11 + $0x120] sm:$0xff]  ;;  %v604_v13 = vld [vmem:[#allocation11 + $0x150] sm:$0xff] }
 0x126   : > { %v602_v12 = vld [vmem:[#allocation11 + $0x140] sm:$0xff] }
 0x127   : > { %740 = vmatmul.mubr.f32.vlgmr.msra.gmra.mrb[0].mxu0 %v634_v11  ;;  %v610_v28 = vld [vmem:[#allocation11 + $0x180] sm:$0xff] }
 0x128   : > { %1594 = vmatpush3.bf16.msra.mxu0 %v1569_v38  ;;  %1588 = vmatpush3.bf16.msra.mxu1 %v1587_v14  ;;  %v1622_v38 = vpack.c.bf16 %v917_v37, %v915_v36  ;;  %v581_v36 = vld [vmem:[#allocation11 + $0x98] sm:$0xff]  ;;  %v2725_v37 = vpack.c.bf16 %v576_v34, %v574_v33  ;;  %v618_v46 = vld [vmem:[#allocation11 + $0x1c0] sm:$0xff] }
 0x129   : > { %1595 = vmatprep.subr.bf16.mxu0 %v2249_v0  ;;  %1589 = vmatprep.subr.bf16.mxu1 %v2249_v0  ;;  %v617_v33 = vld [vmem:[#allocation11 + $0x1b8] sm:$0xff] }
 0x12a   : > { %1533 = vmatprep.mubr.msk.f32.mxu0 %vm2250_vm1, %v2251_v18 }
 0x12c   : > { %1597 = vmatpush3.bf16.msra.mxu0 %v1572_v42  ;;  %1591 = vmatpush3.bf16.msra.mxu1 %v1590_v17  ;;  %v919_v42 = vld [vmem:[#allocation10 + $0x40] sm:$0xff] }
 0x12d   : > { %1598 = vmatprep.subr.bf16.mxu0 %v2249_v0  ;;  %1617 = vmatprep.subr.bf16.mxu1 %v1616_v29  ;;  %v1626_v44 = vpack.c.bf16 %v921_v43, %v919_v42  ;;  %v575_v29 = vld [vmem:[#allocation11 + $0x68] sm:$0xff]  ;;  %v585_v42 = vld [vmem:[#allocation11 + $0xb8] sm:$0xff]  ;;  %v2731_v43 = vpack.c.bf16 %v580_v40, %v578_v39  ;;  %v616_v39 = vld [vmem:[#allocation11 + $0x1b0] sm:$0xff] }
 0x12e   : > { %v619_v40 = vld [vmem:[#allocation11 + $0x1c8] sm:$0xff] }
 0x130   : > { %1600 = vmatpush3.bf16.msra.mxu0 %v1575_v51  ;;  %v930_v51 = vld [vmem:[#allocation10 + $0x98] sm:$0xff] }
 0x131   : > { %1601 = vmatprep.subr.bf16.mxu0 %v2249_v0  ;;  %v1632_v53 = vpack.c.bf16 %v930_v51, %v928_v50  ;;  %v586_v51 = vld [vmem:[#allocation11 + $0xc0] sm:$0xff] }
 0x134   : > { %1603 = vmatpush3.bf16.msra.mxu0 %v1578_v60  ;;  %v931_v60 = vld [vmem:[#allocation10 + $0xa0] sm:$0xff] }
 0x135   : > { %1604 = vmatprep.subr.bf16.mxu0 %v2249_v0  ;;  %v1638_v1 = vpack.c.bf16 %v933_v61, %v931_v60  ;;  %v597_v60 = vld [vmem:[#allocation11 + $0x118] sm:$0xff] }
 0x138   : > { %1606 = vmatpush3.bf16.msra.mxu0 %v1581_v4  ;;  %v937_v4 = vld [vmem:[#allocation10 + $0xd0] sm:$0xff] }
 0x139   : > { %1607 = vmatprep.subr.bf16.mxu0 %v2249_v0  ;;  %v1642_v7 = vpack.c.bf16 %v937_v4, %v935_v3  ;;  %v601_v3 = vld [vmem:[#allocation11 + $0x138] sm:$0xff] }
 0x13c   : > { %1609 = vmatpush3.bf16.msra.mxu0 %v1584_v10  ;;  %v941_v10 = vld [vmem:[#allocation10 + $0xf0] sm:$0xff] }
 0x13d   : > { %1610 = vmatprep.subr.bf16.mxu0 %v2249_v0  ;;  %v1646_v11 = vpack.c.bf16 %v941_v10, %v939_v9  ;;  %v605_v9 = vld [vmem:[#allocation11 + $0x158] sm:$0xff] }
 0x140   : > { %1612 = vmatpush3.bf16.msra.mxu0 %v1587_v14  ;;  %v562_v14 = vld [vmem:[#allocation11] sm:$0xff] }
 0x141   : > { %1613 = vmatprep.subr.bf16.mxu0 %v2249_v0 }
 0x144   : > { %1615 = vmatpush3.bf16.msra.mxu0 %v1590_v17  ;;  %v567_v17 = vld [vmem:[#allocation11 + $0x28] sm:$0xff] }
 0x145   : > { %1649 = vmatprep.subr.bf16.mxu0 %v1648_v15 }
 0x1fa   : > { %v1429_v19 = vpop.f32.mrb[0].mxu0 }
 0x1fb   : > { %v1430_v21 = vpop.f32.mrb[1].mxu0 }
 0x1fc   : > { %v1431_v22 = vadd.f32 %v1430_v21, %v1429_v19  ;;  %v2708_v19 = vpack.c.bf16 %v564_v16, %v562_v14  ;;  %v566_v21 = vld [vmem:[#allocation11 + $0x20] sm:$0xff]  ;;  %v607_v14 = vld [vmem:[#allocation11 + $0x168] sm:$0xff]  ;;  %v2767_v16 = vpack.c.bf16 %v604_v13, %v602_v12 }
 0x1fe   : > { %v742_v23 = vadd.f32 %v1431_v22, %v1386_v20  ;;  %v568_v22 = vld [vmem:[#allocation11 + $0x30] sm:$0xff] }
 0x200   : > { %1499 = vmatmul.mubr.f32.vlgmr.msra.gmra.mrb[0].mxu1 %v742_v23 }
 0x201   : > { %1019 = vmatprep.mubr.f32.mxu1 %v2251_v18  ;;  %1619 = vmatpush1.bf16.msra.mxu1 %v1618_v32  ;;  %v569_v18 = vld [vmem:[#allocation11 + $0x38] sm:$0xff]  ;;  %v2722_v32 = vpack.c.bf16 %v577_v30, %v575_v29  ;;  %v612_v29 = vld [vmem:[#allocation11 + $0x190] sm:$0xff]  ;;  %v615_v30 = vld [vmem:[#allocation11 + $0x1a8] sm:$0xff] }
 0x202   : > { %1621 = vmatprep.subr.bf16.mxu1 %v1620_v35  ;;  %v2710_v20 = vpack.c.bf16 %v569_v18, %v567_v17  ;;  %v579_v35 = vld [vmem:[#allocation11 + $0x88] sm:$0xff]  ;;  %v606_v18 = vld [vmem:[#allocation11 + $0x160] sm:$0xff]  ;;  %v1698_v34 = vpack.c.bf16 %v612_v29, %v610_v28 }
 0x205   : > { %1623 = vmatpush1.bf16.msra.mxu1 %v1622_v38  ;;  %v2728_v38 = vpack.c.bf16 %v581_v36, %v579_v35  ;;  %v1700_v35 = vpack.c.bf16 %v617_v33, %v615_v30  ;;  %v614_v36 = vld [vmem:[#allocation11 + $0x1a0] sm:$0xff] }
 0x206   : > { %1625 = vmatprep.subr.bf16.mxu1 %v1624_v41  ;;  %v583_v41 = vld [vmem:[#allocation11 + $0xa8] sm:$0xff] }
 0x209   : > { %1627 = vmatpush1.bf16.msra.mxu1 %v1626_v44  ;;  %v2734_v44 = vpack.c.bf16 %v585_v42, %v583_v41  ;;  %v621_v41 = vld [vmem:[#allocation11 + $0x1d8] sm:$0xff]  ;;  %v1702_v42 = vpack.c.bf16 %v616_v39, %v614_v36 }
 0x20a   : > { %1629 = vmatprep.subr.bf16.mxu1 %v1628_v48  ;;  %v589_v48 = vld [vmem:[#allocation11 + $0xd8] sm:$0xff]  ;;  %v1704_v45 = vpack.c.bf16 %v621_v41, %v619_v40 }
 0x20b   : > { %v2740_v50 = vpack.c.bf16 %v589_v48, %v587_v47  ;;  %v620_v47 = vld [vmem:[#allocation11 + $0x1d0] sm:$0xff] }
 0x20c   : > { %v1706_v48 = vpack.c.bf16 %v620_v47, %v618_v46 }
 0x20d   : > { %1631 = vmatpush1.bf16.msra.mxu1 %v1630_v52  ;;  %v588_v52 = vld [vmem:[#allocation11 + $0xd0] sm:$0xff] }
 0x20e   : > { %1633 = vmatprep.subr.bf16.mxu1 %v1632_v53  ;;  %v591_v53 = vld [vmem:[#allocation11 + $0xe8] sm:$0xff]  ;;  %v2743_v55 = vpack.c.bf16 %v588_v52, %v586_v51 }
 0x20f   : > { %v2746_v56 = vpack.c.bf16 %v593_v54, %v591_v53 }
 0x211   : > { %1635 = vmatpush1.bf16.msra.mxu1 %v1634_v58  ;;  %v592_v58 = vld [vmem:[#allocation11 + $0xf0] sm:$0xff] }
 0x212   : > { %1637 = vmatprep.subr.bf16.mxu1 %v1636_v59  ;;  %v595_v59 = vld [vmem:[#allocation11 + $0x108] sm:$0xff]  ;;  %v2749_v61 = vpack.c.bf16 %v592_v58, %v590_v57  ;;  %v1387_v57 = vld [vmem:[%s2953_s0] ss:$0 sm:$0xff]  ;;  %s1396_s0 = sshll.u32 %s2369_s15, 8  ;;  %s2107_s15 = scalar_lea.vmem %s2823_s20, 256 }
 0x213   : > { %v2752_v62 = vpack.c.bf16 %v597_v60, %v595_v59  ;;  %v1388_v59 = vld [vmem:[%s2954_s16] ss:$0 sm:$0xff]  ;;  %p2108_p5 = scmp.ne.s32.totalorder %s2823_s20, %s2107_s15 }
 0x215   : > { %1639 = vmatpush1.bf16.msra.mxu1 %v1638_v1  ;;  %v596_v1 = vld [vmem:[#allocation11 + $0x110] sm:$0xff]  ;;  %p2109_p4 = pnand %p2108_p5, %p2959_p9 }
 0x216   : > { %1641 = vmatprep.subr.bf16.mxu1 %v1640_v2  ;;  %v599_v2 = vld [vmem:[#allocation11 + $0x128] sm:$0xff]  ;;  %v2755_v4 = vpack.c.bf16 %v596_v1, %v594_v63 }
 0x217   : > { %v2758_v5 = vpack.c.bf16 %v601_v3, %v599_v2  ;;  %p2110_p7 = pneg %p2109_p4 }
 0x219   : > { %1643 = vmatpush1.bf16.msra.mxu1 %v1642_v7  ;;  %v600_v7 = vld [vmem:[#allocation11 + $0x130] sm:$0xff] }
 0x21a   : > { %1645 = vmatprep.subr.bf16.mxu1 %v1644_v8  ;;  %v603_v8 = vld [vmem:[#allocation11 + $0x148] sm:$0xff]  ;;  %v2761_v10 = vpack.c.bf16 %v600_v7, %v598_v6 }
 0x21d   : > { %1647 = vmatpush1.bf16.msra.mxu1 %v1646_v11  ;;  %v2764_v11 = vpack.c.bf16 %v605_v9, %v603_v8 }
 0x21e   : > { %1713 = vmatprep.subr.bf16.mxu1 %v1648_v15  ;;  %v609_v15 = vld [vmem:[#allocation11 + $0x178] sm:$0xff] }
 0x21f   : > { %v2770_v17 = vpack.c.bf16 %v609_v15, %v607_v14 }
 0x2d3   : > { %v813_v0 = vpop.f32.mrb[0].mxu1 }
 0x2d4   : > { %v2704_v24 = vsub.f32 %v742_v23, %v813_v0  ;;  %v1500_v25 = vpop.f32.mrb[1].mxu1  ;;  %v571_v23 = vld [vmem:[#allocation11 + $0x48] sm:$0xff]  ;;  %v573_v0 = vld [vmem:[#allocation11 + $0x58] sm:$0xff] }
 0x2d5   : > { %v2713_v25 = vpack.c.bf16 %v568_v22, %v566_v21  ;;  %v608_v21 = vld [vmem:[#allocation11 + $0x170] sm:$0xff]  ;;  %v611_v22 = vld [vmem:[#allocation11 + $0x188] sm:$0xff] }
 0x2d6   : > { %v818_v26 = vmul.f32 %v2704_v24, %v2704_v24 }
 0x2d8   : > { %1534 = vmatmul.mubr.f32.vlgmr.msra.gmra.mrb[2].mxu0 %v818_v26  ;;  %v2716_v26 = vpack.c.bf16 %v573_v0, %v571_v23  ;;  %v613_v23 = vld [vmem:[#allocation11 + $0x198] sm:$0xff]  ;;  %v2773_v0 = vpack.c.bf16 %v608_v21, %v606_v18 }
 0x2d9   : > { %1651 = vmatpush1.bf16.msra.mxu0 %v2708_v19  ;;  %v1696_v27 = vpack.c.bf16 %v613_v23, %v611_v22 }
 0x2da   : > { %1653 = vmatprep.subr.bf16.mxu0 %v2710_v20 }
 0x2dd   : > { %1655 = vmatpush1.bf16.msra.mxu0 %v2713_v25 }
 0x2de   : > { %1657 = vmatprep.subr.bf16.mxu0 %v2716_v26 }
 0x2e1   : > { %1659 = vmatpush1.bf16.msra.mxu0 %v2719_v31 }
 0x2e2   : > { %1661 = vmatprep.subr.bf16.mxu0 %v2722_v32 }
 0x2e5   : > { %1663 = vmatpush1.bf16.msra.mxu0 %v2725_v37 }
 0x2e6   : > { %1665 = vmatprep.subr.bf16.mxu0 %v2728_v38 }
 0x2e9   : > { %1667 = vmatpush1.bf16.msra.mxu0 %v2731_v43 }
 0x2ea   : > { %1669 = vmatprep.subr.bf16.mxu0 %v2734_v44 }
 0x2ed   : > { %1671 = vmatpush1.bf16.msra.mxu0 %v2737_v49 }
 0x2ee   : > { %1673 = vmatprep.subr.bf16.mxu0 %v2740_v50 }
 0x2f1   : > { %1675 = vmatpush1.bf16.msra.mxu0 %v2743_v55 }
 0x2f2   : > { %1677 = vmatprep.subr.bf16.mxu0 %v2746_v56 }
 0x2f5   : > { %1679 = vmatpush1.bf16.msra.mxu0 %v2749_v61 }
 0x2f6   : > { %1681 = vmatprep.subr.bf16.mxu0 %v2752_v62 }
 0x2f9   : > { %1683 = vmatpush1.bf16.msra.mxu0 %v2755_v4 }
 0x2fa   : > { %1685 = vmatprep.subr.bf16.mxu0 %v2758_v5 }
 0x2fd   : > { %1687 = vmatpush1.bf16.msra.mxu0 %v2761_v10 }
 0x2fe   : > { %1689 = vmatprep.subr.bf16.mxu0 %v2764_v11 }
 0x301   : > { %1691 = vmatpush1.bf16.msra.mxu0 %v2767_v16 }
 0x302   : > { %1693 = vmatprep.subr.bf16.mxu0 %v2770_v17 }
 0x305   : > { %1695 = vmatpush1.bf16.msra.mxu0 %v2773_v0 }
 0x306   : > { %1697 = vmatprep.subr.bf16.mxu0 %v1696_v27 }
 0x309   : > { %1699 = vmatpush1.bf16.msra.mxu0 %v1698_v34 }
 0x30a   : > { %1701 = vmatprep.subr.bf16.mxu0 %v1700_v35 }
 0x30d   : > { %1703 = vmatpush1.bf16.msra.mxu0 %v1702_v42 }
 0x30e   : > { %1705 = vmatprep.subr.bf16.mxu0 %v1704_v45 }
 0x311   : > { %1707 = vmatpush1.bf16.msra.mxu0 %v1706_v48 }
 0x3ab   : > { %v885_v51 = vpop.f32.mrb[2].mxu0 }
 0x3ac   : > { %v886_v52 = vadd.f32 1e-05, %v885_v51  ;;  %v1535_v53 = vpop.f32.mrb[3].mxu0 }
 0x3ae   : > { %1923 = vrsqrt.f32 %v886_v52 }
 0x3b8   : > { %v1924_v54 = vpop.eup %1923 }
 0x3b9   : > { %v890_v58 = vmul.f32 %v1924_v54, %v2704_v24  ;;  %v623_v24 = vld [vmem:[#allocation11 + $0x1e8] sm:$0xff] }
 0x3bb   : > { %v897_v60 = vmul.f32 %v1387_v57, %v890_v58 }
 0x3bd   : > { %v904_v63 = vadd.f32 %v1388_v59, %v897_v60 }
 0x3bf   : > { %v907_v1 = vmul.f32 0.70710677, %v904_v63  ;;  %v905_v3 = vmul.f32 0.5, %v904_v63 }
 0x3c1   : > { %1925 = verf.f32 %v907_v1 }
 0x3cb   : > { %v1926_v2 = vpop.eup %1925 }
 0x3cc   : > { %v909_v6 = vadd.f32 1.0, %v1926_v2 }
 0x3ce   : > { %v910_v7 = vmul.f32 %v909_v6, %v905_v3 }
 0x3d0   : > { %1020 = vmatmul.mubr.f32.vlgmr.msra.gmra.mrb[2].mxu1 %v910_v7 }
 0x3d1   : > { %1715 = vmatpush1.bf16.msra.mxu1 %v2708_v19  ;;  %v625_v19 = vld [vmem:[#allocation11 + $0x1f8] sm:$0xff] }
 0x3d2   : > { %1717 = vmatprep.subr.bf16.mxu1 %v2710_v20  ;;  %v1708_v20 = vpack.c.bf16 %v625_v19, %v623_v24 }
 0x3d4   : > { %1709 = vmatprep.subr.bf16.mxu0 %v1708_v20 }
 0x3d5   : > { %1719 = vmatpush1.bf16.msra.mxu1 %v2713_v25  ;;  %v622_v25 = vld [vmem:[#allocation11 + $0x1e0] sm:$0xff] }
 0x3d6   : > { %1721 = vmatprep.subr.bf16.mxu1 %v2716_v26  ;;  %v624_v26 = vld [vmem:[#allocation11 + $0x1f0] sm:$0xff] }
 0x3d9   : > { %1723 = vmatpush1.bf16.msra.mxu1 %v2719_v31  ;;  %v1710_v31 = vpack.c.bf16 %v624_v26, %v622_v25 }
 0x3da   : > { %1725 = vmatprep.subr.bf16.mxu1 %v2722_v32  ;;  %v945_v32 = vlaneseq }
 0x3db   : > { %1711 = vmatpush1.bf16.msra.mxu0 %v1710_v31 }
 0x3dd   : > { %1727 = vmatpush1.bf16.msra.mxu1 %v2725_v37  ;;  %v946_v37 = vshrl.u32 %v945_v32, 7 }
 0x3de   : > { %1729 = vmatprep.subr.bf16.mxu1 %v2728_v38 }
 0x3df   : > { %v951_v38 = vsub.s32 1, %v946_v37 }
 0x3e1   : > { %1731 = vmatpush1.bf16.msra.mxu1 %v2731_v43  ;;  %v943_v43 = vld [vmem:[%s2955_s17] sm:$0x3]  ;;  %s2821_s17 = scalar_lea.hbm %s2958_s3, %s1396_s0 }
 0x3e2   : > { %1733 = vmatprep.subr.bf16.mxu1 %v2734_v44  ;;  %v947_v44 = vsub.s32 0, %v946_v37 }
 0x3e5   : > { %1735 = vmatpush1.bf16.msra.mxu1 %v2737_v49  ;;  %v952_v49 = vrot.slane %v943_v43, %v951_v38 }
 0x3e6   : > { %1737 = vmatprep.subr.bf16.mxu1 %v2740_v50  ;;  %v948_v50 = vrot.slane %v943_v43, %v947_v44 }
 0x3e9   : > { %1739 = vmatpush1.bf16.msra.mxu1 %v2743_v55 }
 0x3ea   : > { %1741 = vmatprep.subr.bf16.mxu1 %v2746_v56 }
 0x3ed   : > { %1743 = vmatpush1.bf16.msra.mxu1 %v2749_v61 }
 0x3ee   : > { %1745 = vmatprep.subr.bf16.mxu1 %v2752_v62 }
 0x3f1   : > { %1747 = vmatpush1.bf16.msra.mxu1 %v2755_v4 }
 0x3f2   : > { %1749 = vmatprep.subr.bf16.mxu1 %v2758_v5 }
 0x3f5   : > { %1751 = vmatpush1.bf16.msra.mxu1 %v2761_v10 }
 0x3f6   : > { %1753 = vmatprep.subr.bf16.mxu1 %v2764_v11 }
 0x3f9   : > { %1755 = vmatpush1.bf16.msra.mxu1 %v2767_v16  ;;  %v1026_v16 = vld [vmem:[%s2956_s24] sm:$0x3]  ;;  %s2111_s24 = sshll.u32 %s2252_s14, 4  ;;  %s2112_s24 = int_to_ptr.vmem [resolvable:$false] %s2111_s24 }
 0x3fa   : > { %1757 = vmatprep.subr.bf16.mxu1 %v2770_v17  ;;  %v1027_v17 = vld [vmem:[%s2957_s1] sm:$0x3]  ;;  %v1182_v18 = vrot.slane %v1026_v16, %v947_v44  ;;  %v1186_v22 = vrot.slane %v1026_v16, %v951_v38  ;;  %s2113_s4 = scalar_lea.vmem %s2112_s24, 512  ;;  %p2114_p6 = scmp.lt.s32.totalorder %s2823_s20, %s2112_s24 }
 0x3fb   : > { %v1199_v28 = vrot.slane %v1027_v17, %v951_v38  ;;  %p2115_p12 = scmp.lt.s32.totalorder %s2113_s4, %s2107_s15 }
 0x3fd   : > { %1759 = vmatpush1.bf16.msra.mxu1 %v2773_v0  ;;  %v1195_v0 = vrot.slane %v1027_v17, %v947_v44  ;;  %p2116_p10 = por %p2115_p12, %p2114_p6 }
 0x3fe   : > { %1761 = vmatprep.subr.bf16.mxu1 %v1696_v27 }
 0x3ff   : > { %p2117_p3 = pnand %p2116_p10, %p2110_p7 }
 0x401   : > { %1763 = vmatpush1.bf16.msra.mxu1 %v1698_v34 }
 0x402   : > { %1765 = vmatprep.subr.bf16.mxu1 %v1700_v35 }
 0x405   : > { %1767 = vmatpush1.bf16.msra.mxu1 %v1702_v42 }
 0x406   : > { %1769 = vmatprep.subr.bf16.mxu1 %v1704_v45 }
 0x409   : > { %1771 = vmatpush1.bf16.msra.mxu1 %v1706_v48 }
 0x40a   : > { %1773 = vmatprep.subr.bf16.mxu1 %v1708_v20 }
 0x40d   : > { %1775 = vmatpush1.bf16.msra.mxu1 %v1710_v31 }
 0x4a3   : > { %v1021_v55 = vpop.f32.mrb[2].mxu1 }
 0x4a4   : > { %v1023_v56 = vpop.f32.mrb[3].mxu1  ;;  %v1022_v62 = vadd.f32 %v1021_v55, %v948_v50 }
 0x4a5   : > { %v1024_v61 = vadd.f32 %v1023_v56, %v952_v49 }
 0x4a7   : > { %1092 = vmatprep.mubr.f32.mxu0 %v1024_v61 }
 0x4a8   : > { %1093 = vmatmul.mubr.f32.vlgmr.msra.gmra.mrb[4].mxu0 %v1022_v62 }
 0x57b   : > { %v1094_v4 = vpop.f32.mrb[4].mxu0 }
 0x57c   : > { %v1099_v5 = vsub.f32 %v1022_v62, %v1094_v4  ;;  %v1096_v8 = vpop.f32.mrb[5].mxu0 }
 0x57d   : > { %v1100_v9 = vsub.f32 %v1024_v61, %v1096_v8 }
 0x57e   : > { %v1101_v11 = vmul.f32 %v1099_v5, %v1099_v5 }
 0x57f   : > { %v1102_v10 = vmul.f32 %v1100_v9, %v1100_v9 }
 0x581   : > { %1167 = vmatprep.mubr.f32.mxu1 %v1102_v10 }
 0x582   : > { %1168 = vmatmul.mubr.f32.vlgmr.msra.gmra.mrb[4].mxu1 %v1101_v11 }
 0x655   : > { %v1169_v12 = vpop.f32.mrb[4].mxu1 }
 0x656   : > { %v1170_v13 = vadd.f32 1e-05, %v1169_v12  ;;  %v1171_v14 = vpop.f32.mrb[5].mxu1 }
 0x657   : > { %v1172_v15 = vadd.f32 1e-05, %v1171_v14 }
 0x658   : > { %1927 = vrsqrt.f32 %v1170_v13 }
 0x659   : > { %1929 = vrsqrt.f32 %v1172_v15 }
 0x662   : > { %v1928_v21 = vpop.eup %1927 }
 0x663   : > { %v1930_v23 = vpop.eup %1929  ;;  %v1176_v27 = vmul.f32 %v1928_v21, %v1099_v5 }
 0x664   : > { %v1177_v29 = vmul.f32 %v1930_v23, %v1100_v9 }
 0x665   : > { %v1189_v30 = vmul.f32 %v1182_v18, %v1176_v27 }
 0x666   : > { %v1190_v33 = vmul.f32 %v1186_v22, %v1177_v29 }
 0x667   : > { %v1202_v34 = vadd.f32 %v1195_v0, %v1189_v30 }
 0x668   : > { %v1203_v35 = vadd.f32 %v1199_v28, %v1190_v33 }
 0x669   : > { %v1206_v36 = vmul.f32 0.70710677, %v1202_v34  ;;  %v1204_v42 = vmul.f32 0.5, %v1202_v34 }
 0x66a   : > { %v1207_v39 = vmul.f32 0.70710677, %v1203_v35  ;;  %v1205_v46 = vmul.f32 0.5, %v1203_v35 }
 0x66b   : > { %1931 = verf.f32 %v1206_v36 }
 0x66c   : > { %1933 = verf.f32 %v1207_v39 }
 0x675   : > { %v1932_v40 = vpop.eup %1931 }
 0x676   : > { %v1934_v41 = vpop.eup %1933  ;;  %v1210_v45 = vadd.f32 1.0, %v1932_v40 }
 0x677   : > { %v1211_v47 = vadd.f32 1.0, %v1934_v41 }
 0x678   : > { %v1212_v48 = vmul.f32 %v1210_v45, %v1204_v42 }
 0x679   : > { %v1213_v51 = vmul.f32 %v1211_v47, %v1205_v46 }
 0x67a   : > { %1214 = vst [vmem:[%s540_s2] sm:$0xff] %v1212_v48 }
 0x67b   : > { %1215 = vst [vmem:[%s540_s2 + $0x8] sm:$0xff] %v1213_v51 }
 0x67c   : > { %2120 = shalt.err (!%p2117_p3)
}
 0x67d   : > { %s2121_s9 = scalar_lea.hbm %s2821_s17, 256  ;;  %s2125_s18 = scalar_lea.hbm %s2958_s3, 512 }
 0x67e   : > { %p2122_p8 = scmp.ne.s32.totalorder %s2821_s17, %s2121_s9  ;;  %p2126_p1 = scmp.lt.u32.totalorder %s2821_s17, %s2958_s3 }
 0x67f   : > { %p2127_p0 = scmp.lt.u32.totalorder %s2125_s18, %s2121_s9  ;;  %p2129_p5 = scmp.lt.u32.totalorder %s2121_s9, %s2821_s17 }
 0x680   : > { %p2123_p11 = pnand %p2122_p8, %p2959_p9 }
 0x681   : > { %p2128_p13 = por %p2127_p0, %p2126_p1 }
 0x682   : > { %p2124_p2 = pneg %p2123_p11 }
 0x683   : > { %p2130_p4 = por %p2129_p5, %p2128_p13 }
 0x685   : > { %p2131_p7 = pnand %p2130_p4, %p2124_p2 }
 0x687   : > { %2134 = shalt.err (!%p2131_p7)
}
 0x688   : > { %1796 = dma.vmem_to_hbm [thread:$0]  (%p2959_p9), %s2823_s20, 256, %s2821_s17, %s1217_s10  }
 0x689 PF: > { %s1243_s16 = sand.u32 1, %s2201_s21   ;;  %p2960_p6 = scmp.ne.s32.totalorder %s2931_s13, 0 }
 0x68a   : > { %p2961_p12 = scmp.ge.s32.totalorder %s2237_s30, 2  ;;  %s1244_s7 = scalar_lea.sflag [#allocation4], %s1243_s16 }
 0x68c   : > { %p1819_p10 = pnand %p2961_p12, %p2960_p6 }
 0x68e   : > { %2196 = dma.done.wait (!%p1819_p10), %s1244_s7, 256  }
 0x68f   : > { %2198 = vsyncadd (!%p1819_p10), %s1244_s7, 4294967040  ;;  %p30_p9 = scmp.ge.s32.totalorder %s2489_s19, 4   ;;  %s2962_s21 = smov %s2205_s22 }
 0x690   : > { %s2963_s22 = smov %s2209_s23  ;;  %s2964_s23 = smov %s2524_s27 }
 0x691   : > { %s2965_s24 = smov %s2217_s25  ;;  %s2966_s25 = smov %s2221_s26 }
 0x692   : > { %s2967_s26 = smov %s2596_s8  ;;  %s2968_s27 = smov %s2229_s28 }
 0x693   : > { %s2969_s28 = smov %s2233_s29  ;;  %s2970_s29 = smov %s2516_s12 }
 0x694   : > { %s2971_s30 = smov %s2489_s19  ;;  %32 = sbr.rel (!%p30_p9) target bundleno = 26 (0x1a), region = 142 }
 0x69b   :  { %1249 = vsyncpa [#allocation3], 1 }
 0x69c   :  { %1251 = vsyncpa [#allocation3 + $0x1], 1 }
 0x69d   :  { %1252 = vsyncpa [#allocation6], 1 }
 0x69e   :  { %1254 = vsyncpa [#allocation6 + $0x1], 1 }
 0x69f   :  { %1255 = vsyncpa [#allocation9], 1 }
 0x6a0   :  { %1256 = vsyncpa [#allocation12], 1 }
 0x6a1   :  { %1257 = vsyncpa [#allocation4], 1 }
 0x6a2   :  { %1259 = vsyncpa [#allocation4 + $0x1], 1 }

</bundles_post_ra>
